<compile_context>
chip_gen: v7x
topology: tpu7x:2x2x1
jax: 0.10.0
libtpu: 0.0.40
codegen_flags: <defaults>
</compile_context>

<pallas_src>
import functools
import math

import jax
import jax.numpy as jnp
from jax.experimental import pallas as pl
from jax.experimental.pallas import tpu as pltpu

EPS = 1e-5
NUM_GROUPS = 16        # GroupNorm(16, C) in the PyTorch module
CP = 128               # lane-padded channel width (all feature dims live in 128 lanes)
BF = jnp.bfloat16
F32 = jnp.float32


def _mm(a, b):
    """MXU matmul: bf16 operands, f32 accumulation."""
    return jnp.dot(a.astype(BF), b.astype(BF), preferred_element_type=F32)


def _gn(h, p, gamma, beta):
    """GroupNorm via a block-diagonal group-averaging matrix `p` (bf16, entries 1/gs).

    Centered variance + clamp (avoids E[x^2]-mean^2 cancellation).  Stats, rsqrt and
    the affine stay in f32; only the two tiny stat matmuls feed the MXU.  Padded lanes
    are zeroed by the zero-padded gamma/beta.
    """
    mean = jnp.dot(h.astype(BF), p, preferred_element_type=F32)
    d = h - mean
    var = jnp.dot((d * d).astype(BF), p, preferred_element_type=F32)
    var = jnp.maximum(var, 0.0)
    return d * jax.lax.rsqrt(var + EPS) * gamma + beta


def _z_tile(z_ref, k, tile_k):
    """K-slab of Z, whether Z is streamed per K tile or VMEM-resident (full array)."""
    if z_ref.shape[0] == tile_k:          # streamed per-K-tile block
        return z_ref[...]
    start = pl.multiple_of(k * tile_k, tile_k)
    return z_ref[pl.ds(start, tile_k), :]


# ---------------------------------------------------------------------------
# Kernels
# ---------------------------------------------------------------------------
def stage1_kernel(x_ref, w1_ref, b1_ref,
                  w4_ref, b4_ref, g3_ref, bt3_ref, p3_ref,
                  w5_ref, b5_ref, g4_ref, bt4_ref, p4_ref,
                  wc1_ref,
                  x1_ref, y_ref, z1_ref):
    # linear1 (fused, no split: branch1 lives in lanes [0,h), branch2 in [h,2h)) + relu.
    # TODO(synk): F.dropout is identity here (module evaluated with training=False).
    y = jnp.maximum(_mm(x_ref[...], w1_ref[...]) + b1_ref[...], 0.0)

    # branch 1: linear4 -> relu -> norm3 -> linear5 -> relu -> norm4 -> + residual
    h1 = jnp.maximum(_mm(y, w4_ref[...]) + b4_ref[...], 0.0)
    h1 = _gn(h1, p3_ref[...], g3_ref[...], bt3_ref[...])
    h1 = jnp.maximum(_mm(h1, w5_ref[...]) + b5_ref[...], 0.0)
    h1 = _gn(h1, p4_ref[...], g4_ref[...], bt4_ref[...])
    # x1 stored in bf16: it only ever feeds a bf16 MXU operand in stage 3, so the
    # rounding point is unchanged while its HBM write+read is halved.
    x1_ref[...] = (h1 + y).astype(x1_ref.dtype)   # lanes >= h killed later by zero rows

    # branch 2 prologue: residual copy + X @ Wc1 feeding the first GCN aggregation
    y_ref[...] = y
    z1_ref[...] = _mm(y, wc1_ref[...]).astype(z1_ref.dtype)


def agg_stage2_kernel(mask_ref, a_ref, z_ref, y_ref,
                      bc1_ref, g1_ref, bt1_ref, p1_ref, wc2_ref,
                      x2b_ref, z2_ref, acc_ref, *, tile_k):
    i = pl.program_id(0)
    k = pl.program_id(1)
    nk = pl.num_programs(1)

    @pl.when(k == 0)
    def _():
        acc_ref[...] = jnp.zeros_like(acc_ref)

    # Block-sparse skip: empty adjacency tiles contribute nothing.
    @pl.when(mask_ref[i * nk + k] != 0)
    def _():
        acc_ref[...] += jnp.dot(a_ref[...], _z_tile(z_ref, k, tile_k),
                                preferred_element_type=F32)

    @pl.when(k == nk - 1)
    def _():
        s = jnp.maximum(acc_ref[...] + bc1_ref[...], 0.0)            # conv1 bias + relu
        s = _gn(s, p1_ref[...], g1_ref[...], bt1_ref[...])           # norm1
        x2b = s + y_ref[...]                                         # + residual (x2)
        x2b_ref[...] = x2b
        z2_ref[...] = _mm(x2b, wc2_ref[...]).astype(z2_ref.dtype)    # X @ Wc2 for conv2


def agg_stage3_kernel(mask_ref, a_ref, z_ref, x2b_ref, x1_ref,
                      bc2_ref, g2_ref, bt2_ref, p2_ref,
                      w2_ref, b2_ref, w3_ref, b3_ref,
                      out_ref, acc_ref, *, tile_k, hidden, out_c):
    i = pl.program_id(0)
    k = pl.program_id(1)
    nk = pl.num_programs(1)

    @pl.when(k == 0)
    def _():
        acc_ref[...] = jnp.zeros_like(acc_ref)

    @pl.when(mask_ref[i * nk + k] != 0)
    def _():
        acc_ref[...] += jnp.dot(a_ref[...], _z_tile(z_ref, k, tile_k),
                                preferred_element_type=F32)

    @pl.when(k == nk - 1)
    def _():
        s = jnp.maximum(acc_ref[...] + bc2_ref[...], 0.0)            # conv2 bias + relu
        s = _gn(s, p2_ref[...], g2_ref[...], bt2_ref[...])           # norm2
        x2c = x2b_ref[...] + s                                       # + residual

        # head: cat([x1, x2]) is a free lane-select (x1 in lanes [0,h), x2 in [h,2h))
        lane = jax.lax.broadcasted_iota(jnp.int32, x2c.shape, 1)
        comb = jnp.where(lane < hidden, x1_ref[...], x2c)
        h = _mm(comb, w2_ref[...]) + b2_ref[...]                     # linear2 (fused)
        h = _mm(h, w3_ref[...]) + b3_ref[...]                        # linear3

        # lane-dense masked log_softmax over the real out_c lanes
        logits = jnp.where(lane < out_c, h, -1e30)
        m = jnp.max(logits, axis=1, keepdims=True)
        sh = logits - m
        lse = jnp.log(jnp.sum(jnp.exp(sh), axis=1, keepdims=True))
        out_ref[...] = sh - lse


# ---------------------------------------------------------------------------
# Wrapper / glue
# ---------------------------------------------------------------------------
def _place(mat, r0, c0, dtype):
    out = jnp.zeros((CP, CP), F32)
    out = out.at[r0:r0 + mat.shape[0], c0:c0 + mat.shape[1]].set(mat)
    return out.astype(dtype)


def _place_vec(vec, c0):
    out = jnp.zeros((1, CP), F32)
    return out.at[0, c0:c0 + vec.shape[-1]].set(vec.reshape(-1))


def _group_avg_mat(c, c0):
    gs = c // NUM_GROUPS
    idx = jnp.arange(c)
    same = (idx[:, None] // gs) == (idx[None, :] // gs)
    return _place(same.astype(F32) / gs, c0, c0, BF)   # 1/gs in {0.5, 0.25}: exact in bf16


def pack_params(p, hidden):
    """Zero-pad / lane-place raw parameters into 128-lane, kernel-ready tensors (one-time).

    Correctness of the lane-padding scheme relies on padded weight rows / gamma / beta
    being exactly zero (they are: everything starts from jnp.zeros)."""
    h = hidden
    return {
        "w1": _place(p["w1"], 0, 0, BF), "b1": _place_vec(p["b1"], 0),
        "w4": _place(p["w4"], 0, 0, BF), "b4": _place_vec(p["b4"], 0),
        "g3": _place_vec(p["g3"], 0), "bt3": _place_vec(p["bt3"], 0),
        "p3": _group_avg_mat(2 * h, 0),
        "w5": _place(p["w5"], 0, 0, BF), "b5": _place_vec(p["b5"], 0),
        "g4": _place_vec(p["g4"], 0), "bt4": _place_vec(p["bt4"], 0),
        "p4": _group_avg_mat(h, 0),
        # branch 2 (GCN convs) lives in lanes [h, 2h)
        "wc1": _place(p["wc1"], h, h, BF), "bc1": _place_vec(p["bc1"], h),
        "g1": _place_vec(p["g1"], h), "bt1": _place_vec(p["bt1"], h),
        "p1": _group_avg_mat(h, h),
        "wc2": _place(p["wc2"], h, h, BF), "bc2": _place_vec(p["bc2"], h),
        "g2": _place_vec(p["g2"], h), "bt2": _place_vec(p["bt2"], h),
        "p2": _group_avg_mat(h, h),          # norm2 averaging matrix (explicit, == p1)
        "w2": _place(p["w2"], 0, 0, BF), "b2": _place_vec(p["b2"], 0),
        "w3": _place(p["w3"], 0, 0, BF), "b3": _place_vec(p["b3"], 0),
    }


def _vmem_limit_bytes():
    """Generous scoped-VMEM limit, capped safely below physical capacity."""
    try:
        cap = int(pltpu.get_tpu_info().vmem_capacity_bytes)
    except Exception:
        cap = 128 << 20
    return min(64 << 20, (cap * 3) // 4)


def naive_gcn_forward(x, a_norm, params, *, hidden, out_c,
                      tile_r=256, tile_k=512, z_vmem_budget=16 << 20):
    """Full NaiveGCN forward.

    tile_r / tile_k tile the (node-row, node-K) aggregation grid.  Defaults (256, 512)
    amortize the ~0.35 us per-grid-step overhead and fill v6e's 2x256^2 MXU; tile_r=256
    keeps grid_r >= 2 on mid-sized graphs so v7x's two TensorCores both get work.  Both
    are clamped for small graphs.  Z (X@W) is held VMEM-resident across row tiles when
    it fits `z_vmem_budget` (x2 for double buffering); otherwise it is streamed per K
    tile as before.
    """
    n, in_c = x.shape
    assert 2 * hidden <= CP and in_c <= CP and out_c <= CP
    assert hidden % NUM_GROUPS == 0

    n128 = pl.cdiv(n, 128) * 128
    tile_r = max(128, min(tile_r, n128))
    tile_k = max(128, min(tile_k, n128))
    step = tile_r * tile_k // math.gcd(tile_r, tile_k)     # npad must divide by both
    npad = pl.cdiv(n, step) * step
    grid_r = npad // tile_r
    grid_k = npad // tile_k

    kp = pack_params(params, hidden)

    # Streamed operands narrowed: x as bf16 (only ever a bf16 MXU operand), A built
    # directly in bf16 (no f32 (npad, npad) intermediate).
    xp = jnp.zeros((npad, CP), BF).at[:n, :in_c].set(x.astype(BF))
    a_pad = jnp.zeros((npad, npad), BF).at[:n, :n].set(a_norm.astype(BF))

    # Per-(row-tile, K-tile) nonzero mask for block-sparse skipping (scalar prefetch).
    amax = jnp.max(jnp.abs(a_pad.astype(F32)).reshape(grid_r, tile_r, grid_k, tile_k),
                   axis=(1, 3))
    tile_mask = (amax > 0.0).astype(jnp.int32).reshape(-1)

    vmem_limit = _vmem_limit_bytes()

    row_i = pl.BlockSpec((tile_r, CP), lambda i: (i, 0))
    mat_i = pl.BlockSpec((CP, CP), lambda i: (0, 0))
    vec_i = pl.BlockSpec((1, CP), lambda i: (0, 0))

    # ---- stage 1: row-local (linear1 + MLP branch + X@Wc1), 1-D "parallel" grid ----
    x1f, yres, z1 = pl.pallas_call(
        stage1_kernel,
        out_shape=(jax.ShapeDtypeStruct((npad, CP), BF),     # x1 (bf16, see kernel note)
                   jax.ShapeDtypeStruct((npad, CP), F32),    # residual y (f32 add later)
                   jax.ShapeDtypeStruct((npad, CP), BF)),    # X @ Wc1
        grid=(grid_r,),
        in_specs=[row_i, mat_i, vec_i,
                  mat_i, vec_i, vec_i, vec_i, mat_i,
                  mat_i, vec_i, vec_i, vec_i, mat_i,
                  mat_i],
        out_specs=(row_i, row_i, row_i),
        compiler_params=pltpu.CompilerParams(
            dimension_semantics=("parallel",), vmem_limit_bytes=vmem_limit),
    )(xp, kp["w1"], kp["b1"],
      kp["w4"], kp["b4"], kp["g3"], kp["bt3"], kp["p3"],
      kp["w5"], kp["b5"], kp["g4"], kp["bt4"], kp["p4"],
      kp["wc1"])

    # index_maps of the aggregation stages take the prefetch mask ref as trailing arg.
    a_spec = pl.BlockSpec((tile_r, tile_k), lambda i, k, m: (i, k))
    z_resident = (2 * npad * CP * 2) <= z_vmem_budget
    if z_resident:
        z_spec = pl.BlockSpec((npad, CP), lambda i, k, m: (0, 0))    # VMEM-resident Z
    else:
        z_spec = pl.BlockSpec((tile_k, CP), lambda i, k, m: (k, 0))  # streamed fallback
    row_ik = pl.BlockSpec((tile_r, CP), lambda i, k, m: (i, 0))
    mat_ik = pl.BlockSpec((CP, CP), lambda i, k, m: (0, 0))
    vec_ik = pl.BlockSpec((1, CP), lambda i, k, m: (0, 0))
    agg_params = pltpu.CompilerParams(
        dimension_semantics=("parallel", "arbitrary"), vmem_limit_bytes=vmem_limit)

    # ---- stage 2: conv1 aggregation (tiled A_hat @ Z, f32 accumulator) + epilogue ----
    x2b, z2 = pl.pallas_call(
        functools.partial(agg_stage2_kernel, tile_k=tile_k),
        out_shape=(jax.ShapeDtypeStruct((npad, CP), F32),
                   jax.ShapeDtypeStruct((npad, CP), BF)),
        grid_spec=pltpu.PrefetchScalarGridSpec(
            num_scalar_prefetch=1,
            grid=(grid_r, grid_k),
            in_specs=[a_spec, z_spec, row_ik,
                      vec_ik, vec_ik, vec_ik, mat_ik, mat_ik],
            out_specs=(row_ik, row_ik),
            scratch_shapes=[pltpu.VMEM((tile_r, CP), F32)]),
        compiler_params=agg_params,
    )(tile_mask, a_pad, z1, yres,
      kp["bc1"], kp["g1"], kp["bt1"], kp["p1"], kp["wc2"])

    # ---- stage 3: conv2 aggregation + head (linear2/linear3/log_softmax) ----
    out = pl.pallas_call(
        functools.partial(agg_stage3_kernel, tile_k=tile_k, hidden=hidden, out_c=out_c),
        out_shape=jax.ShapeDtypeStruct((npad, CP), F32),
        grid_spec=pltpu.PrefetchScalarGridSpec(
            num_scalar_prefetch=1,
            grid=(grid_r, grid_k),
            in_specs=[a_spec, z_spec, row_ik, row_ik,
                      vec_ik, vec_ik, vec_ik, mat_ik,
                      mat_ik, vec_ik, mat_ik, vec_ik],
            out_specs=row_ik,
            scratch_shapes=[pltpu.VMEM((tile_r, CP), F32)]),
        compiler_params=agg_params,
    )(tile_mask, a_pad, z2, x2b, x1f,
      kp["bc2"], kp["g2"], kp["bt2"], kp["p2"],
      kp["w2"], kp["b2"], kp["w3"], kp["b3"])

    return out[:n, :out_c]


def build_gcn_adjacency(edge_index, num_nodes):
    # TODO(synk): .at[...].set dedups repeated edges; PyG's gcn_norm counts multiplicity.
    src, dst = edge_index[0], edge_index[1]
    a = jnp.zeros((num_nodes, num_nodes), F32).at[dst, src].set(1.0)
    a = jnp.maximum(a, a.T)                                          # undirected graph
    a = jnp.maximum(a, jnp.eye(num_nodes, dtype=F32))                # add self loops
    deg_inv_sqrt = 1.0 / jnp.sqrt(a.sum(axis=1))
    return a * deg_inv_sqrt[:, None] * deg_inv_sqrt[None, :]


def init_params(key, in_c, hidden, out_c):
    h, h2 = hidden, 2 * hidden
    ks = jax.random.split(key, 14)

    def w(k, i, o):
        return jax.random.normal(k, (i, o), F32) / jnp.sqrt(jnp.float32(i))

    def b(k, o):
        return jax.random.normal(k, (o,), F32) * 0.05

    return {
        "w1": w(ks[0], in_c, h2), "b1": b(ks[1], h2),
        "w4": w(ks[2], h, h2), "b4": b(ks[3], h2),
        "w5": w(ks[4], h2, h), "b5": b(ks[5], h),
        "wc1": w(ks[6], h, h), "bc1": b(ks[7], h),
        "wc2": w(ks[8], h, h), "bc2": b(ks[9], h),
        "w2": w(ks[10], h2, h), "b2": b(ks[11], h),
        "w3": w(ks[12], h, out_c), "b3": b(ks[13], out_c),
        # GroupNorm affine params (PyTorch default init: weight=1, bias=0)
        "g3": jnp.ones((h2,), F32), "bt3": jnp.zeros((h2,), F32),
        "g4": jnp.ones((h,), F32), "bt4": jnp.zeros((h,), F32),
        "g1": jnp.ones((h,), F32), "bt1": jnp.zeros((h,), F32),
        "g2": jnp.ones((h,), F32), "bt2": jnp.zeros((h,), F32),
    }


def reference_forward(x, a_norm, p):
    """Pure-JAX reference of the torch forward, using the same numerical policy as the
    kernel (bf16 MXU operands, f32 accumulation / GroupNorm statistics)."""
    q = lambda t: t.astype(BF).astype(F32)

    def mm(a, b):
        return jnp.dot(a.astype(BF), b.astype(BF), preferred_element_type=F32)

    def gn(hv, gamma, beta):
        n, c = hv.shape
        gs = c // NUM_GROUPS
        hq = q(hv)                      # mirrors the kernel's bf16 stat-matmul operands
        mean = jnp.repeat(hq.reshape(n, NUM_GROUPS, gs).mean(-1), gs, axis=1)
        d = hv - mean
        var = jnp.repeat(q(d * d).reshape(n, NUM_GROUPS, gs).mean(-1), gs, axis=1)
        return d * jax.lax.rsqrt(jnp.maximum(var, 0.0) + EPS) * gamma + beta

    h = p["w4"].shape[0]
    y = jax.nn.relu(mm(x, p["w1"]) + p["b1"])
    x1, x2 = y[:, :h], y[:, h:]
    res = x1
    x1 = jax.nn.relu(mm(x1, p["w4"]) + p["b4"])
    x1 = gn(x1, p["g3"], p["bt3"])
    x1 = jax.nn.relu(mm(x1, p["w5"]) + p["b5"])
    x1 = gn(x1, p["g4"], p["bt4"])
    x1 = x1 + res
    res = x2
    x2 = jax.nn.relu(mm(a_norm, mm(x2, p["wc1"])) + p["bc1"])
    x2 = gn(x2, p["g1"], p["bt1"])
    x2 = x2 + res
    res = x2
    x2 = jax.nn.relu(mm(a_norm, mm(x2, p["wc2"])) + p["bc2"])
    x2 = gn(x2, p["g2"], p["bt2"])
    x2 = res + x2
    hcat = jnp.concatenate([x1, x2], axis=1)
    out = mm(hcat, p["w2"]) + p["b2"]
    out = mm(out, p["w3"]) + p["b3"]
    return jax.nn.log_softmax(out, axis=1)


if __name__ == "__main__":
    key = jax.random.PRNGKey(0)
    N, E = 16, 40
    in_c, hidden, out_c = 16, 32, 8

    kx, ke1, ke2, kprm = jax.random.split(key, 4)
    x = jax.random.normal(kx, (N, in_c), F32)
    src = jax.random.randint(ke1, (E,), 0, N)
    dst = jax.random.randint(ke2, (E,), 0, N)
    edge_index = jnp.stack([src, dst])

    a_norm = build_gcn_adjacency(edge_index, N)
    params = init_params(kprm, in_c, hidden, out_c)

    out = naive_gcn_forward(x, a_norm, params, hidden=hidden, out_c=out_c)
    out = jax.block_until_ready(out)

    ref = reference_forward(x, a_norm, params)
    assert out.shape == (N, out_c), out.shape
    err = float(jnp.max(jnp.abs(out - ref)))
    # Tolerance covers f32 accumulation-order noise amplified by GroupNorm over groups
    # of 2 channels (ill-conditioned at near-tied groups) under the shared bf16 policy.
    assert jnp.allclose(out, ref, atol=2e-2, rtol=2e-2), err
    print("KERNEL_OK")
</pallas_src>

<mosaic_0001>
module attributes {stable_mosaic.version = 11 : i64} {
  func.func @stage1_kernel(%arg0: i32, %arg1: memref<128x128xbf16, #tpu.memory_space<vmem>>, %arg2: memref<128x128xbf16, #tpu.memory_space<vmem>>, %arg3: memref<1x128xf32, #tpu.memory_space<vmem>>, %arg4: memref<128x128xbf16, #tpu.memory_space<vmem>>, %arg5: memref<1x128xf32, #tpu.memory_space<vmem>>, %arg6: memref<1x128xf32, #tpu.memory_space<vmem>>, %arg7: memref<1x128xf32, #tpu.memory_space<vmem>>, %arg8: memref<128x128xbf16, #tpu.memory_space<vmem>>, %arg9: memref<128x128xbf16, #tpu.memory_space<vmem>>, %arg10: memref<1x128xf32, #tpu.memory_space<vmem>>, %arg11: memref<1x128xf32, #tpu.memory_space<vmem>>, %arg12: memref<1x128xf32, #tpu.memory_space<vmem>>, %arg13: memref<128x128xbf16, #tpu.memory_space<vmem>>, %arg14: memref<128x128xbf16, #tpu.memory_space<vmem>>, %arg15: memref<128x128xbf16, #tpu.memory_space<vmem>>, %arg16: memref<128x128xf32, #tpu.memory_space<vmem>>, %arg17: memref<128x128xbf16, #tpu.memory_space<vmem>>) attributes {dimension_semantics = [#tpu.dimension_semantics<parallel>], iteration_bounds = array<i64: 1>, scalar_prefetch = 0 : i64, scratch_operands = 0 : i64, tpu.core_type = #tpu.core_type<tc>, window_params = [{transform_indices = @transform_0, window_bounds = array<i64: 128, 128>}, {pipeline_mode = #tpu.pipeline_mode<synchronous>, transform_indices = @transform_1, window_bounds = array<i64: 128, 128>}, {pipeline_mode = #tpu.pipeline_mode<synchronous>, transform_indices = @transform_2, window_bounds = array<i64: 1, 128>}, {pipeline_mode = #tpu.pipeline_mode<synchronous>, transform_indices = @transform_3, window_bounds = array<i64: 128, 128>}, {pipeline_mode = #tpu.pipeline_mode<synchronous>, transform_indices = @transform_4, window_bounds = array<i64: 1, 128>}, {pipeline_mode = #tpu.pipeline_mode<synchronous>, transform_indices = @transform_5, window_bounds = array<i64: 1, 128>}, {pipeline_mode = #tpu.pipeline_mode<synchronous>, transform_indices = @transform_6, window_bounds = array<i64: 1, 128>}, {pipeline_mode = #tpu.pipeline_mode<synchronous>, transform_indices = @transform_7, window_bounds = array<i64: 128, 128>}, {pipeline_mode = #tpu.pipeline_mode<synchronous>, transform_indices = @transform_8, window_bounds = array<i64: 128, 128>}, {pipeline_mode = #tpu.pipeline_mode<synchronous>, transform_indices = @transform_9, window_bounds = array<i64: 1, 128>}, {pipeline_mode = #tpu.pipeline_mode<synchronous>, transform_indices = @transform_10, window_bounds = array<i64: 1, 128>}, {pipeline_mode = #tpu.pipeline_mode<synchronous>, transform_indices = @transform_11, window_bounds = array<i64: 1, 128>}, {pipeline_mode = #tpu.pipeline_mode<synchronous>, transform_indices = @transform_12, window_bounds = array<i64: 128, 128>}, {pipeline_mode = #tpu.pipeline_mode<synchronous>, transform_indices = @transform_13, window_bounds = array<i64: 128, 128>}, {transform_indices = @transform_14, window_bounds = array<i64: 128, 128>}, {transform_indices = @transform_15, window_bounds = array<i64: 128, 128>}, {transform_indices = @transform_16, window_bounds = array<i64: 128, 128>}]} {
    %c0 = arith.constant 0 : index
    %c0_0 = arith.constant 0 : index
    %0 = vector.load %arg1[%c0, %c0_0] : memref<128x128xbf16, #tpu.memory_space<vmem>>, vector<128x128xbf16>
    %c0_1 = arith.constant 0 : index
    %c0_2 = arith.constant 0 : index
    %1 = vector.load %arg2[%c0_1, %c0_2] : memref<128x128xbf16, #tpu.memory_space<vmem>>, vector<128x128xbf16>
    %cst = arith.constant dense<0.000000e+00> : vector<128x128xf32>
    %2 = tpu.matmul %0, %1, %cst {dimension_numbers = #tpu.dot_dimension_numbers<[1], [0], [0], [1], [0, 0, 1, 1], [], []>} : vector<128x128xbf16>, vector<128x128xbf16>, vector<128x128xf32> -> vector<128x128xf32>
    %c0_3 = arith.constant 0 : index
    %c0_4 = arith.constant 0 : index
    %3 = vector.load %arg3[%c0_3, %c0_4] : memref<1x128xf32, #tpu.memory_space<vmem>>, vector<1x128xf32>
    %4 = vector.broadcast %3 : vector<1x128xf32> to vector<128x128xf32>
    %5 = arith.addf %2, %4 : vector<128x128xf32>
    %cst_5 = arith.constant 0.000000e+00 : f32
    %6 = vector.broadcast %cst_5 : f32 to vector<128x128xf32>
    %7 = arith.maximumf %5, %6 : vector<128x128xf32>
    %c0_6 = arith.constant 0 : index
    %c0_7 = arith.constant 0 : index
    %8 = vector.load %arg4[%c0_6, %c0_7] : memref<128x128xbf16, #tpu.memory_space<vmem>>, vector<128x128xbf16>
    %9 = arith.truncf %7 : vector<128x128xf32> to vector<128x128xbf16>
    %cst_8 = arith.constant dense<0.000000e+00> : vector<128x128xf32>
    %10 = tpu.matmul %9, %8, %cst_8 {dimension_numbers = #tpu.dot_dimension_numbers<[1], [0], [0], [1], [0, 0, 1, 1], [], []>} : vector<128x128xbf16>, vector<128x128xbf16>, vector<128x128xf32> -> vector<128x128xf32>
    %c0_9 = arith.constant 0 : index
    %c0_10 = arith.constant 0 : index
    %11 = vector.load %arg5[%c0_9, %c0_10] : memref<1x128xf32, #tpu.memory_space<vmem>>, vector<1x128xf32>
    %12 = vector.broadcast %11 : vector<1x128xf32> to vector<128x128xf32>
    %13 = arith.addf %10, %12 : vector<128x128xf32>
    %cst_11 = arith.constant 0.000000e+00 : f32
    %14 = vector.broadcast %cst_11 : f32 to vector<128x128xf32>
    %15 = arith.maximumf %13, %14 : vector<128x128xf32>
    %c0_12 = arith.constant 0 : index
    %c0_13 = arith.constant 0 : index
    %16 = vector.load %arg8[%c0_12, %c0_13] : memref<128x128xbf16, #tpu.memory_space<vmem>>, vector<128x128xbf16>
    %c0_14 = arith.constant 0 : index
    %c0_15 = arith.constant 0 : index
    %17 = vector.load %arg6[%c0_14, %c0_15] : memref<1x128xf32, #tpu.memory_space<vmem>>, vector<1x128xf32>
    %c0_16 = arith.constant 0 : index
    %c0_17 = arith.constant 0 : index
    %18 = vector.load %arg7[%c0_16, %c0_17] : memref<1x128xf32, #tpu.memory_space<vmem>>, vector<1x128xf32>
    %19 = arith.truncf %15 : vector<128x128xf32> to vector<128x128xbf16>
    %cst_18 = arith.constant dense<0.000000e+00> : vector<128x128xf32>
    %20 = tpu.matmul %19, %16, %cst_18 {dimension_numbers = #tpu.dot_dimension_numbers<[1], [0], [0], [1], [0, 0, 1, 1], [], []>} : vector<128x128xbf16>, vector<128x128xbf16>, vector<128x128xf32> -> vector<128x128xf32>
    %21 = arith.subf %15, %20 : vector<128x128xf32>
    %22 = arith.mulf %21, %21 : vector<128x128xf32>
    %23 = arith.truncf %22 : vector<128x128xf32> to vector<128x128xbf16>
    %cst_19 = arith.constant dense<0.000000e+00> : vector<128x128xf32>
    %24 = tpu.matmul %23, %16, %cst_19 {dimension_numbers = #tpu.dot_dimension_numbers<[1], [0], [0], [1], [0, 0, 1, 1], [], []>} : vector<128x128xbf16>, vector<128x128xbf16>, vector<128x128xf32> -> vector<128x128xf32>
    %cst_20 = arith.constant 0.000000e+00 : f32
    %25 = vector.broadcast %cst_20 : f32 to vector<128x128xf32>
    %26 = arith.maximumf %24, %25 : vector<128x128xf32>
    %cst_21 = arith.constant 9.99999974E-6 : f32
    %27 = vector.broadcast %cst_21 : f32 to vector<128x128xf32>
    %28 = arith.addf %26, %27 : vector<128x128xf32>
    %29 = math.rsqrt %28 : vector<128x128xf32>
    %30 = arith.mulf %21, %29 : vector<128x128xf32>
    %31 = vector.broadcast %17 : vector<1x128xf32> to vector<128x128xf32>
    %32 = arith.mulf %30, %31 : vector<128x128xf32>
    %33 = vector.broadcast %18 : vector<1x128xf32> to vector<128x128xf32>
    %34 = arith.addf %32, %33 : vector<128x128xf32>
    %c0_22 = arith.constant 0 : index
    %c0_23 = arith.constant 0 : index
    %35 = vector.load %arg9[%c0_22, %c0_23] : memref<128x128xbf16, #tpu.memory_space<vmem>>, vector<128x128xbf16>
    %36 = arith.truncf %34 : vector<128x128xf32> to vector<128x128xbf16>
    %cst_24 = arith.constant dense<0.000000e+00> : vector<128x128xf32>
    %37 = tpu.matmul %36, %35, %cst_24 {dimension_numbers = #tpu.dot_dimension_numbers<[1], [0], [0], [1], [0, 0, 1, 1], [], []>} : vector<128x128xbf16>, vector<128x128xbf16>, vector<128x128xf32> -> vector<128x128xf32>
    %c0_25 = arith.constant 0 : index
    %c0_26 = arith.constant 0 : index
    %38 = vector.load %arg10[%c0_25, %c0_26] : memref<1x128xf32, #tpu.memory_space<vmem>>, vector<1x128xf32>
    %39 = vector.broadcast %38 : vector<1x128xf32> to vector<128x128xf32>
    %40 = arith.addf %37, %39 : vector<128x128xf32>
    %cst_27 = arith.constant 0.000000e+00 : f32
    %41 = vector.broadcast %cst_27 : f32 to vector<128x128xf32>
    %42 = arith.maximumf %40, %41 : vector<128x128xf32>
    %c0_28 = arith.constant 0 : index
    %c0_29 = arith.constant 0 : index
    %43 = vector.load %arg13[%c0_28, %c0_29] : memref<128x128xbf16, #tpu.memory_space<vmem>>, vector<128x128xbf16>
    %c0_30 = arith.constant 0 : index
    %c0_31 = arith.constant 0 : index
    %44 = vector.load %arg11[%c0_30, %c0_31] : memref<1x128xf32, #tpu.memory_space<vmem>>, vector<1x128xf32>
    %c0_32 = arith.constant 0 : index
    %c0_33 = arith.constant 0 : index
    %45 = vector.load %arg12[%c0_32, %c0_33] : memref<1x128xf32, #tpu.memory_space<vmem>>, vector<1x128xf32>
    %46 = arith.truncf %42 : vector<128x128xf32> to vector<128x128xbf16>
    %cst_34 = arith.constant dense<0.000000e+00> : vector<128x128xf32>
    %47 = tpu.matmul %46, %43, %cst_34 {dimension_numbers = #tpu.dot_dimension_numbers<[1], [0], [0], [1], [0, 0, 1, 1], [], []>} : vector<128x128xbf16>, vector<128x128xbf16>, vector<128x128xf32> -> vector<128x128xf32>
    %48 = arith.subf %42, %47 : vector<128x128xf32>
    %49 = arith.mulf %48, %48 : vector<128x128xf32>
    %50 = arith.truncf %49 : vector<128x128xf32> to vector<128x128xbf16>
    %cst_35 = arith.constant dense<0.000000e+00> : vector<128x128xf32>
    %51 = tpu.matmul %50, %43, %cst_35 {dimension_numbers = #tpu.dot_dimension_numbers<[1], [0], [0], [1], [0, 0, 1, 1], [], []>} : vector<128x128xbf16>, vector<128x128xbf16>, vector<128x128xf32> -> vector<128x128xf32>
    %cst_36 = arith.constant 0.000000e+00 : f32
    %52 = vector.broadcast %cst_36 : f32 to vector<128x128xf32>
    %53 = arith.maximumf %51, %52 : vector<128x128xf32>
    %cst_37 = arith.constant 9.99999974E-6 : f32
    %54 = vector.broadcast %cst_37 : f32 to vector<128x128xf32>
    %55 = arith.addf %53, %54 : vector<128x128xf32>
    %56 = math.rsqrt %55 : vector<128x128xf32>
    %57 = arith.mulf %48, %56 : vector<128x128xf32>
    %58 = vector.broadcast %44 : vector<1x128xf32> to vector<128x128xf32>
    %59 = arith.mulf %57, %58 : vector<128x128xf32>
    %60 = vector.broadcast %45 : vector<1x128xf32> to vector<128x128xf32>
    %61 = arith.addf %59, %60 : vector<128x128xf32>
    %62 = arith.addf %61, %7 : vector<128x128xf32>
    %63 = arith.truncf %62 : vector<128x128xf32> to vector<128x128xbf16>
    %c0_38 = arith.constant 0 : index
    %c0_39 = arith.constant 0 : index
    %64 = vector.load %arg15[%c0_38, %c0_39] : memref<128x128xbf16, #tpu.memory_space<vmem>>, vector<128x128xbf16>
    tpu.vector_store %arg15[%c0_38, %c0_39], %63 {strides = array<i32>} : memref<128x128xbf16, #tpu.memory_space<vmem>>, vector<128x128xbf16>,
    %c0_40 = arith.constant 0 : index
    %c0_41 = arith.constant 0 : index
    %65 = vector.load %arg16[%c0_40, %c0_41] : memref<128x128xf32, #tpu.memory_space<vmem>>, vector<128x128xf32>
    tpu.vector_store %arg16[%c0_40, %c0_41], %7 {strides = array<i32>} : memref<128x128xf32, #tpu.memory_space<vmem>>, vector<128x128xf32>,
    %c0_42 = arith.constant 0 : index
    %c0_43 = arith.constant 0 : index
    %66 = vector.load %arg14[%c0_42, %c0_43] : memref<128x128xbf16, #tpu.memory_space<vmem>>, vector<128x128xbf16>
    %67 = arith.truncf %7 : vector<128x128xf32> to vector<128x128xbf16>
    %cst_44 = arith.constant dense<0.000000e+00> : vector<128x128xf32>
    %68 = tpu.matmul %67, %66, %cst_44 {dimension_numbers = #tpu.dot_dimension_numbers<[1], [0], [0], [1], [0, 0, 1, 1], [], []>} : vector<128x128xbf16>, vector<128x128xbf16>, vector<128x128xf32> -> vector<128x128xf32>
    %69 = arith.truncf %68 : vector<128x128xf32> to vector<128x128xbf16>
    %c0_45 = arith.constant 0 : index
    %c0_46 = arith.constant 0 : index
    %70 = vector.load %arg17[%c0_45, %c0_46] : memref<128x128xbf16, #tpu.memory_space<vmem>>, vector<128x128xbf16>
    tpu.vector_store %arg17[%c0_45, %c0_46], %69 {strides = array<i32>} : memref<128x128xbf16, #tpu.memory_space<vmem>>, vector<128x128xbf16>,
    return
  }
  func.func @transform_0(%arg0: i32) -> (i32, i32) {
    %c0_i32 = arith.constant 0 : i32
    %c0_i32_0 = arith.constant 0 : i32
    return %arg0, %c0_i32 : i32, i32
  }
  func.func @transform_1(%arg0: i32) -> (i32, i32) {
    %c0_i32 = arith.constant 0 : i32
    %c0_i32_0 = arith.constant 0 : i32
    %c0_i32_1 = arith.constant 0 : i32
    return %c0_i32, %c0_i32_0 : i32, i32
  }
  func.func @transform_2(%arg0: i32) -> (i32, i32) {
    %c0_i32 = arith.constant 0 : i32
    %c0_i32_0 = arith.constant 0 : i32
    %c0_i32_1 = arith.constant 0 : i32
    return %c0_i32, %c0_i32_0 : i32, i32
  }
  func.func @transform_3(%arg0: i32) -> (i32, i32) {
    %c0_i32 = arith.constant 0 : i32
    %c0_i32_0 = arith.constant 0 : i32
    %c0_i32_1 = arith.constant 0 : i32
    return %c0_i32, %c0_i32_0 : i32, i32
  }
  func.func @transform_4(%arg0: i32) -> (i32, i32) {
    %c0_i32 = arith.constant 0 : i32
    %c0_i32_0 = arith.constant 0 : i32
    %c0_i32_1 = arith.constant 0 : i32
    return %c0_i32, %c0_i32_0 : i32, i32
  }
  func.func @transform_5(%arg0: i32) -> (i32, i32) {
    %c0_i32 = arith.constant 0 : i32
    %c0_i32_0 = arith.constant 0 : i32
    %c0_i32_1 = arith.constant 0 : i32
    return %c0_i32, %c0_i32_0 : i32, i32
  }
  func.func @transform_6(%arg0: i32) -> (i32, i32) {
    %c0_i32 = arith.constant 0 : i32
    %c0_i32_0 = arith.constant 0 : i32
    %c0_i32_1 = arith.constant 0 : i32
    return %c0_i32, %c0_i32_0 : i32, i32
  }
  func.func @transform_7(%arg0: i32) -> (i32, i32) {
    %c0_i32 = arith.constant 0 : i32
    %c0_i32_0 = arith.constant 0 : i32
    %c0_i32_1 = arith.constant 0 : i32
    return %c0_i32, %c0_i32_0 : i32, i32
  }
  func.func @transform_8(%arg0: i32) -> (i32, i32) {
    %c0_i32 = arith.constant 0 : i32
    %c0_i32_0 = arith.constant 0 : i32
    %c0_i32_1 = arith.constant 0 : i32
    return %c0_i32, %c0_i32_0 : i32, i32
  }
  func.func @transform_9(%arg0: i32) -> (i32, i32) {
    %c0_i32 = arith.constant 0 : i32
    %c0_i32_0 = arith.constant 0 : i32
    %c0_i32_1 = arith.constant 0 : i32
    return %c0_i32, %c0_i32_0 : i32, i32
  }
  func.func @transform_10(%arg0: i32) -> (i32, i32) {
    %c0_i32 = arith.constant 0 : i32
    %c0_i32_0 = arith.constant 0 : i32
    %c0_i32_1 = arith.constant 0 : i32
    return %c0_i32, %c0_i32_0 : i32, i32
  }
  func.func @transform_11(%arg0: i32) -> (i32, i32) {
    %c0_i32 = arith.constant 0 : i32
    %c0_i32_0 = arith.constant 0 : i32
    %c0_i32_1 = arith.constant 0 : i32
    return %c0_i32, %c0_i32_0 : i32, i32
  }
  func.func @transform_12(%arg0: i32) -> (i32, i32) {
    %c0_i32 = arith.constant 0 : i32
    %c0_i32_0 = arith.constant 0 : i32
    %c0_i32_1 = arith.constant 0 : i32
    return %c0_i32, %c0_i32_0 : i32, i32
  }
  func.func @transform_13(%arg0: i32) -> (i32, i32) {
    %c0_i32 = arith.constant 0 : i32
    %c0_i32_0 = arith.constant 0 : i32
    %c0_i32_1 = arith.constant 0 : i32
    return %c0_i32, %c0_i32_0 : i32, i32
  }
  func.func @transform_14(%arg0: i32) -> (i32, i32) {
    %c0_i32 = arith.constant 0 : i32
    %c0_i32_0 = arith.constant 0 : i32
    return %arg0, %c0_i32 : i32, i32
  }
  func.func @transform_15(%arg0: i32) -> (i32, i32) {
    %c0_i32 = arith.constant 0 : i32
    %c0_i32_0 = arith.constant 0 : i32
    return %arg0, %c0_i32 : i32, i32
  }
  func.func @transform_16(%arg0: i32) -> (i32, i32) {
    %c0_i32 = arith.constant 0 : i32
    %c0_i32_0 = arith.constant 0 : i32
    return %arg0, %c0_i32 : i32, i32
  }
}

</mosaic_0001>

<bundles_post_ra>
// kernel: tpu_custom_call.1
= control target key start
LH: loop header
LB: loop body
LE: loop exit
PB: predicated region body
PF: predicated region fallthrough
CT: control target
= control target key end

     0   :  { %s4239_s0 = inlined_call_operand.hbm [shape: bf16[128,128], index: 0, kind: input, shape index: {}]   ;;  %s4240_s1 = inlined_call_operand.hbm [shape: bf16[128,128], index: 1, kind: input, shape index: {}]   ;;  %s4241_s2 = inlined_call_operand.hbm [shape: f32[1,128], index: 2, kind: input, shape index: {}]   ;;  %s4242_s3 = inlined_call_operand.hbm [shape: bf16[128,128], index: 3, kind: input, shape index: {}]   ;;  %s4243_s4 = inlined_call_operand.hbm [shape: f32[1,128], index: 4, kind: input, shape index: {}]   ;;  %s4244_s5 = inlined_call_operand.hbm [shape: f32[1,128], index: 5, kind: input, shape index: {}]   ;;  %s4245_s6 = inlined_call_operand.hbm [shape: f32[1,128], index: 6, kind: input, shape index: {}]   ;;  %s4246_s7 = inlined_call_operand.hbm [shape: bf16[128,128], index: 7, kind: input, shape index: {}]   ;;  %s4247_s8 = inlined_call_operand.hbm [shape: bf16[128,128], index: 8, kind: input, shape index: {}]   ;;  %s4248_s9 = inlined_call_operand.hbm [shape: f32[1,128], index: 9, kind: input, shape index: {}]   ;;  %s4249_s10 = inlined_call_operand.hbm [shape: f32[1,128], index: 10, kind: input, shape index: {}]   ;;  %s4250_s11 = inlined_call_operand.hbm [shape: f32[1,128], index: 11, kind: input, shape index: {}]   ;;  %s4251_s12 = inlined_call_operand.hbm [shape: bf16[128,128], index: 12, kind: input, shape index: {}]   ;;  %s4252_s13 = inlined_call_operand.hbm [shape: bf16[128,128], index: 13, kind: input, shape index: {}]   ;;  %s4253_s14 = inlined_call_operand.hbm [shape: bf16[128,128], index: 14, kind: output, shape index: {0}]   ;;  %s4254_s15 = inlined_call_operand.hbm [shape: f32[128,128], index: 15, kind: output, shape index: {1}]   ;;  %s4255_s16 = inlined_call_operand.hbm [shape: bf16[128,128], index: 16, kind: output, shape index: {2}]  }
   0x1   :  { %4259 = sst [smem:[#allocation41_spill]] %s4239_s0 }
   0x2   :  { %22 = vsyncpa [#allocation3], 0 }
   0x3   :  { %23 = vsyncpa [#allocation6], 0 }
   0x4   :  { %24 = vsyncpa [#allocation9], 0 }
   0x5   :  { %25 = vsyncpa [#allocation12], 0 }
   0x6   :  { %26 = vsyncpa [#allocation15], 0 }
   0x7   :  { %27 = vsyncpa [#allocation18], 0 }
   0x8   :  { %28 = vsyncpa [#allocation21], 0 }
   0x9   :  { %29 = vsyncpa [#allocation24], 0 }
   0xa   :  { %30 = vsyncpa [#allocation4], 0 }
   0xb   :  { %31 = vsyncpa [#allocation27], 0  ;;  %s3241_s21 = smov [#allocation5]   ;;  %s3242_s23 = smov [#allocation8]  }
   0xc   :  { %s49_s22 = sshll.u32 %s3241_s21, 4  ;;  %s71_s24 = sshll.u32 %s3242_s23, 4  ;;  %s50_s22 = int_to_ptr.vmem [resolvable:$true] %s49_s22  ;;  %s3347_s24 = int_to_ptr.vmem [resolvable:$true] %s71_s24 }
   0xd   :  { %s2847_s27 = scalar_lea.hbm %s4240_s1, 1024 }
   0xe   :  { %p2848_p0 = scmp.ne.s32.totalorder %s4240_s1, %s2847_s27  ;;  %p2851_p1 = scmp.lt.u32.totalorder %s2847_s27, %s4240_s1 }
  0x10   :  { %p2853_p2 = pnand %p2851_p1, %p2848_p0 }
  0x12   :  { %2856 = shalt.err (!%p2853_p2)
}
  0x13   :  { %s2857_s17 = scalar_lea.vmem %s50_s22, 1024  ;;  %p2862_p4 = scmp.lt.s32.totalorder %s50_s22, %s50_s22 }
  0x14   :  { %p2858_p3 = scmp.ne.s32.totalorder %s50_s22, %s2857_s17  ;;  %p2863_p5 = scmp.lt.s32.totalorder %s2857_s17, %s2857_s17 }
  0x16   :  { %p2864_p6 = por %p2863_p5, %p2862_p4 }
  0x18   :  { %p2865_p7 = pnand %p2864_p6, %p2858_p3 }
  0x1a   :  { %2868 = shalt.err (!%p2865_p7)
}
  0x1b   :  { %s3243_s18 = smov 64   ;;  %s3244_s19 = smov 4  }
  0x1c   :  { %55 = dma.hbm_to_vmem [thread:$0]  %s4240_s1, 1024, %s50_s22, [#allocation6], %s3243_s18, %s3243_s18, %s3244_s19  }
  0x1d   :  { %s2869_s26 = scalar_lea.hbm %s4242_s3, 1024 }
  0x1e   :  { %p2870_p8 = scmp.ne.s32.totalorder %s4242_s3, %s2869_s26  ;;  %p2873_p9 = scmp.lt.u32.totalorder %s2869_s26, %s4242_s3 }
  0x20   :  { %p2875_p10 = pnand %p2873_p9, %p2870_p8 }
  0x22   :  { %2878 = shalt.err (!%p2875_p10)
}
  0x23   :  { %s2879_s0 = scalar_lea.vmem %s3347_s24, 1024  ;;  %p2884_p12 = scmp.lt.s32.totalorder %s3347_s24, %s3347_s24 }
  0x24   :  { %p2880_p11 = scmp.ne.s32.totalorder %s3347_s24, %s2879_s0  ;;  %p2885_p13 = scmp.lt.s32.totalorder %s2879_s0, %s2879_s0 }
  0x26   :  { %p2886_p0 = por %p2885_p13, %p2884_p12 }
  0x28   :  { %p2887_p1 = pnand %p2886_p0, %p2880_p11 }
  0x2a   :  { %2890 = shalt.err (!%p2887_p1)
}
  0x2b   :  { %77 = dma.hbm_to_vmem [thread:$0]  %s4242_s3, 1024, %s3347_s24, [#allocation9], %s3243_s18, %s3243_s18, %s3244_s19  }
  0x2c   :  { %s3245_s17 = smov [#allocation11]   ;;  %s3246_s21 = smov [#allocation14]  }
  0x2d   :  { %s94_s20 = sshll.u32 %s3245_s17, 4  ;;  %s113_s23 = sshll.u32 %s3246_s21, 4  ;;  %s95_s20 = int_to_ptr.vmem [resolvable:$true] %s94_s20  ;;  %s3384_s23 = int_to_ptr.vmem [resolvable:$true] %s113_s23 }
  0x2e   :  { %s2891_s27 = scalar_lea.hbm %s4244_s5, 16 }
  0x2f   :  { %p2892_p2 = scmp.ne.s32.totalorder %s4244_s5, %s2891_s27  ;;  %p2895_p3 = scmp.lt.u32.totalorder %s2891_s27, %s4244_s5 }
  0x31   :  { %p2897_p4 = pnand %p2895_p3, %p2892_p2 }
  0x33   :  { %2900 = shalt.err (!%p2897_p4)
}
  0x34   :  { %s2901_s3 = scalar_lea.vmem %s95_s20, 16  ;;  %s2905_s24 = scalar_lea.vmem %s95_s20, 32 }
  0x35   :  { %p2902_p5 = scmp.ne.s32.totalorder %s95_s20, %s2901_s3  ;;  %p2906_p6 = scmp.lt.s32.totalorder %s95_s20, %s95_s20 }
  0x36   :  { %p2907_p7 = scmp.lt.s32.totalorder %s2905_s24, %s2901_s3 }
  0x38   :  { %p2908_p8 = por %p2907_p7, %p2906_p6 }
  0x3a   :  { %p2909_p9 = pnand %p2908_p8, %p2902_p5 }
  0x3c   :  { %2912 = shalt.err (!%p2909_p9)
}
  0x3d   :  { %97 = dma.hbm_to_vmem [thread:$0]  %s4244_s5, 16, %s95_s20, [#allocation12]  }
  0x3e   :  { %s2913_s25 = scalar_lea.hbm %s4246_s7, 1024 }
  0x3f   :  { %p2914_p10 = scmp.ne.s32.totalorder %s4246_s7, %s2913_s25  ;;  %p2917_p11 = scmp.lt.u32.totalorder %s2913_s25, %s4246_s7 }
  0x41   :  { %p2919_p12 = pnand %p2917_p11, %p2914_p10 }
  0x43   :  { %2922 = shalt.err (!%p2919_p12)
}
  0x44   :  { %s2923_s30 = scalar_lea.vmem %s3384_s23, 1024  ;;  %p2928_p0 = scmp.lt.s32.totalorder %s3384_s23, %s3384_s23 }
  0x45   :  { %p2924_p13 = scmp.ne.s32.totalorder %s3384_s23, %s2923_s30  ;;  %p2929_p1 = scmp.lt.s32.totalorder %s2923_s30, %s2923_s30 }
  0x47   :  { %p2930_p2 = por %p2929_p1, %p2928_p0 }
  0x49   :  { %p2931_p3 = pnand %p2930_p2, %p2924_p13 }
  0x4b   :  { %2934 = shalt.err (!%p2931_p3)
}
  0x4c   :  { %119 = dma.hbm_to_vmem [thread:$0]  %s4246_s7, 1024, %s3384_s23, [#allocation15], %s3243_s18, %s3243_s18, %s3244_s19  }
  0x4d   :  { %s3247_s0 = smov [#allocation17]   ;;  %s3248_s24 = smov [#allocation20]  }
  0x4e   :  { %s138_s3 = sshll.u32 %s3247_s0, 4  ;;  %s158_s1 = sshll.u32 %s3248_s24, 4  ;;  %s139_s3 = int_to_ptr.vmem [resolvable:$true] %s138_s3  ;;  %s159_s1 = int_to_ptr.vmem [resolvable:$true] %s158_s1 }
  0x4f   :  { %s2935_s21 = scalar_lea.hbm %s4248_s9, 16 }
  0x50   :  { %p2936_p4 = scmp.ne.s32.totalorder %s4248_s9, %s2935_s21  ;;  %p2939_p5 = scmp.lt.u32.totalorder %s2935_s21, %s4248_s9 }
  0x52   :  { %p2941_p6 = pnand %p2939_p5, %p2936_p4 }
  0x54   :  { %2944 = shalt.err (!%p2941_p6)
}
  0x55   :  { %s2945_s7 = scalar_lea.vmem %s139_s3, 16  ;;  %s2949_s23 = scalar_lea.vmem %s139_s3, 32 }
  0x56   :  { %p2946_p7 = scmp.ne.s32.totalorder %s139_s3, %s2945_s7  ;;  %p2950_p8 = scmp.lt.s32.totalorder %s139_s3, %s139_s3 }
  0x57   :  { %p2951_p9 = scmp.lt.s32.totalorder %s2949_s23, %s2945_s7 }
  0x59   :  { %p2952_p10 = por %p2951_p9, %p2950_p8 }
  0x5b   :  { %p2953_p11 = pnand %p2952_p10, %p2946_p7 }
  0x5d   :  { %2956 = shalt.err (!%p2953_p11)
}
  0x5e   :  { %141 = dma.hbm_to_vmem [thread:$0]  %s4248_s9, 16, %s139_s3, [#allocation18]  }
  0x5f   :  { %s2957_s0 = scalar_lea.hbm %s4250_s11, 16 }
  0x60   :  { %p2958_p12 = scmp.ne.s32.totalorder %s4250_s11, %s2957_s0  ;;  %p2961_p13 = scmp.lt.u32.totalorder %s2957_s0, %s4250_s11 }
  0x62   :  { %p2963_p0 = pnand %p2961_p13, %p2958_p12 }
  0x64   :  { %2966 = shalt.err (!%p2963_p0)
}
  0x65   :  { %s2967_s25 = scalar_lea.vmem %s159_s1, 16  ;;  %s2971_s26 = scalar_lea.vmem %s159_s1, 32 }
  0x66   :  { %p2968_p1 = scmp.ne.s32.totalorder %s159_s1, %s2967_s25  ;;  %p2972_p2 = scmp.lt.s32.totalorder %s159_s1, %s159_s1 }
  0x67   :  { %p2973_p3 = scmp.lt.s32.totalorder %s2971_s26, %s2967_s25 }
  0x69   :  { %p2974_p4 = por %p2973_p3, %p2972_p2 }
  0x6b   :  { %p2975_p5 = pnand %p2974_p4, %p2968_p1 }
  0x6d   :  { %2978 = shalt.err (!%p2975_p5)
}
  0x6e   :  { %161 = dma.hbm_to_vmem [thread:$0]  %s4250_s11, 16, %s159_s1, [#allocation21]  }
  0x6f   :  { %s3249_s27 = smov [#allocation2]   ;;  %s3250_s7 = smov [#allocation7]  }
  0x70   :  { %s37_s28 = sshll.u32 %s3249_s27, 4  ;;  %s62_s23 = sshll.u32 %s3250_s7, 4  ;;  %s38_s28 = int_to_ptr.vmem [resolvable:$true] %s37_s28  ;;  %s63_s23 = int_to_ptr.vmem [resolvable:$true] %s62_s23 }
  0x71   :  { %s4260_s5 = sld [smem:[#allocation41_spill]] }
  0x77   :  { %s2979_s20 = scalar_lea.hbm %s4260_s5, 1024 }
  0x78   :  { %p2980_p6 = scmp.ne.s32.totalorder %s4260_s5, %s2979_s20  ;;  %p2983_p7 = scmp.lt.u32.totalorder %s2979_s20, %s4260_s5 }
  0x7a   :  { %p2985_p8 = pnand %p2983_p7, %p2980_p6 }
  0x7c   :  { %2988 = shalt.err (!%p2985_p8)
}
  0x7d   :  { %s2989_s11 = scalar_lea.vmem %s38_s28, 1024  ;;  %p2994_p10 = scmp.lt.s32.totalorder %s38_s28, %s38_s28 }
  0x7e   :  { %p2990_p9 = scmp.ne.s32.totalorder %s38_s28, %s2989_s11  ;;  %p2995_p11 = scmp.lt.s32.totalorder %s2989_s11, %s2989_s11 }
  0x80   :  { %p2996_p12 = por %p2995_p11, %p2994_p10 }
  0x82   :  { %p2997_p13 = pnand %p2996_p12, %p2990_p9 }
  0x84   :  { %3000 = shalt.err (!%p2997_p13)
}
  0x85   :  { %43 = dma.hbm_to_vmem [thread:$0]  %s4260_s5, 1024, %s38_s28, [#allocation3], %s3243_s18, %s3243_s18, %s3244_s19  }
  0x86   :  { %s3001_s9 = scalar_lea.hbm %s4241_s2, 16 }
  0x87   :  { %p3002_p0 = scmp.ne.s32.totalorder %s4241_s2, %s3001_s9  ;;  %p3005_p1 = scmp.lt.u32.totalorder %s3001_s9, %s4241_s2 }
  0x89   :  { %p3007_p2 = pnand %p3005_p1, %p3002_p0 }
  0x8b   :  { %3010 = shalt.err (!%p3007_p2)
}
  0x8c   :  { %s3011_s30 = scalar_lea.vmem %s63_s23, 16  ;;  %s3015_s20 = scalar_lea.vmem %s63_s23, 32 }
  0x8d   :  { %p3012_p3 = scmp.ne.s32.totalorder %s63_s23, %s3011_s30  ;;  %p3016_p4 = scmp.lt.s32.totalorder %s63_s23, %s63_s23 }
  0x8e   :  { %p3017_p5 = scmp.lt.s32.totalorder %s3015_s20, %s3011_s30 }
  0x90   :  { %p3018_p6 = por %p3017_p5, %p3016_p4 }
  0x92   :  { %p3019_p7 = pnand %p3018_p6, %p3012_p3 }
  0x94   :  { %3022 = shalt.err (!%p3019_p7)
}
  0x95   :  { %65 = dma.hbm_to_vmem [thread:$0]  %s4241_s2, 16, %s63_s23, [#allocation6]  }
  0x96   :  { %s3251_s0 = smov [#allocation10]   ;;  %s3252_s22 = smov [#allocation13]  }
  0x97   :  { %s84_s24 = sshll.u32 %s3251_s0, 4  ;;  %s104_s17 = sshll.u32 %s3252_s22, 4  ;;  %s85_s24 = int_to_ptr.vmem [resolvable:$true] %s84_s24  ;;  %s105_s17 = int_to_ptr.vmem [resolvable:$true] %s104_s17 }
  0x98   :  { %s3023_s21 = scalar_lea.hbm %s4243_s4, 16 }
  0x99   :  { %p3024_p8 = scmp.ne.s32.totalorder %s4243_s4, %s3023_s21  ;;  %p3027_p9 = scmp.lt.u32.totalorder %s3023_s21, %s4243_s4 }
  0x9b   :  { %p3029_p10 = pnand %p3027_p9, %p3024_p8 }
  0x9d   :  { %3032 = shalt.err (!%p3029_p10)
}
  0x9e   :  { %s3033_s2 = scalar_lea.vmem %s85_s24, 16  ;;  %s3037_s23 = scalar_lea.vmem %s85_s24, 32 }
  0x9f   :  { %p3034_p11 = scmp.ne.s32.totalorder %s85_s24, %s3033_s2  ;;  %p3038_p12 = scmp.lt.s32.totalorder %s85_s24, %s85_s24 }
  0xa0   :  { %p3039_p13 = scmp.lt.s32.totalorder %s3037_s23, %s3033_s2 }
  0xa2   :  { %p3040_p0 = por %p3039_p13, %p3038_p12 }
  0xa4   :  { %p3041_p1 = pnand %p3040_p0, %p3034_p11 }
  0xa6   :  { %3044 = shalt.err (!%p3041_p1)
}
  0xa7   :  { %87 = dma.hbm_to_vmem [thread:$0]  %s4243_s4, 16, %s85_s24, [#allocation9]  }
  0xa8   :  { %s3045_s20 = scalar_lea.hbm %s4245_s6, 16 }
  0xa9   :  { %p3046_p2 = scmp.ne.s32.totalorder %s4245_s6, %s3045_s20  ;;  %p3049_p3 = scmp.lt.u32.totalorder %s3045_s20, %s4245_s6 }
  0xab   :  { %p3051_p4 = pnand %p3049_p3, %p3046_p2 }
  0xad   :  { %3054 = shalt.err (!%p3051_p4)
}
  0xae   :  { %s3055_s11 = scalar_lea.vmem %s105_s17, 16  ;;  %s3059_s1 = scalar_lea.vmem %s105_s17, 32 }
  0xaf   :  { %p3056_p5 = scmp.ne.s32.totalorder %s105_s17, %s3055_s11  ;;  %p3060_p6 = scmp.lt.s32.totalorder %s105_s17, %s105_s17 }
  0xb0   :  { %p3061_p7 = scmp.lt.s32.totalorder %s3059_s1, %s3055_s11 }
  0xb2   :  { %p3062_p8 = por %p3061_p7, %p3060_p6 }
  0xb4   :  { %p3063_p9 = pnand %p3062_p8, %p3056_p5 }
  0xb6   :  { %3066 = shalt.err (!%p3063_p9)
}
  0xb7   :  { %107 = dma.hbm_to_vmem [thread:$0]  %s4245_s6, 16, %s105_s17, [#allocation12]  }
  0xb8   :  { %s3253_s21 = smov [#allocation16]   ;;  %s3254_s26 = smov [#allocation19]  }
  0xb9   :  { %s125_s25 = sshll.u32 %s3253_s21, 4  ;;  %s148_s9 = sshll.u32 %s3254_s26, 4  ;;  %s126_s25 = int_to_ptr.vmem [resolvable:$true] %s125_s25  ;;  %s149_s9 = int_to_ptr.vmem [resolvable:$true] %s148_s9 }
  0xba   :  { %s3067_s23 = scalar_lea.hbm %s4247_s8, 1024 }
  0xbb   :  { %p3068_p10 = scmp.ne.s32.totalorder %s4247_s8, %s3067_s23  ;;  %p3071_p11 = scmp.lt.u32.totalorder %s3067_s23, %s4247_s8 }
  0xbd   :  { %p3073_p12 = pnand %p3071_p11, %p3068_p10 }
  0xbf   :  { %3076 = shalt.err (!%p3073_p12)
}
  0xc0   :  { %s3077_s6 = scalar_lea.vmem %s126_s25, 1024  ;;  %p3082_p0 = scmp.lt.s32.totalorder %s126_s25, %s126_s25 }
  0xc1   :  { %p3078_p13 = scmp.ne.s32.totalorder %s126_s25, %s3077_s6  ;;  %p3083_p1 = scmp.lt.s32.totalorder %s3077_s6, %s3077_s6 }
  0xc3   :  { %p3084_p2 = por %p3083_p1, %p3082_p0 }
  0xc5   :  { %p3085_p3 = pnand %p3084_p2, %p3078_p13 }
  0xc7   :  { %3088 = shalt.err (!%p3085_p3)
}
  0xc8   :  { %131 = dma.hbm_to_vmem [thread:$0]  %s4247_s8, 1024, %s126_s25, [#allocation15], %s3243_s18, %s3243_s18, %s3244_s19  }
  0xc9   :  { %s3089_s0 = scalar_lea.hbm %s4249_s10, 16 }
  0xca   :  { %p3090_p4 = scmp.ne.s32.totalorder %s4249_s10, %s3089_s0  ;;  %p3093_p5 = scmp.lt.u32.totalorder %s3089_s0, %s4249_s10 }
  0xcc   :  { %p3095_p6 = pnand %p3093_p5, %p3090_p4 }
  0xce   :  { %3098 = shalt.err (!%p3095_p6)
}
  0xcf   :  { %s3099_s24 = scalar_lea.vmem %s149_s9, 16  ;;  %s3103_s21 = scalar_lea.vmem %s149_s9, 32 }
  0xd0   :  { %p3100_p7 = scmp.ne.s32.totalorder %s149_s9, %s3099_s24  ;;  %p3104_p8 = scmp.lt.s32.totalorder %s149_s9, %s149_s9 }
  0xd1   :  { %p3105_p9 = scmp.lt.s32.totalorder %s3103_s21, %s3099_s24 }
  0xd3   :  { %p3106_p10 = por %p3105_p9, %p3104_p8 }
  0xd5   :  { %p3107_p11 = pnand %p3106_p10, %p3100_p7 }
  0xd7   :  { %3110 = shalt.err (!%p3107_p11)
}
  0xd8   :  { %151 = dma.hbm_to_vmem [thread:$0]  %s4249_s10, 16, %s149_s9, [#allocation18]  }
  0xd9   :  { %s3255_s26 = smov [#allocation22]   ;;  %s3256_s2 = smov [#allocation23]  }
  0xda   :  { %s167_s3 = sshll.u32 %s3255_s26, 4  ;;  %s179_s23 = sshll.u32 %s3256_s2, 4  ;;  %s168_s3 = int_to_ptr.vmem [resolvable:$true] %s167_s3  ;;  %s3520_s23 = int_to_ptr.vmem [resolvable:$true] %s179_s23 }
  0xdb   :  { %s3111_s29 = scalar_lea.hbm %s4251_s12, 1024 }
  0xdc   :  { %p3112_p12 = scmp.ne.s32.totalorder %s4251_s12, %s3111_s29  ;;  %p3115_p13 = scmp.lt.u32.totalorder %s3111_s29, %s4251_s12 }
  0xde   :  { %p3117_p0 = pnand %p3115_p13, %p3112_p12 }
  0xe0   :  { %3120 = shalt.err (!%p3117_p0)
}
  0xe1   :  { %s3121_s10 = scalar_lea.vmem %s168_s3, 1024  ;;  %p3126_p2 = scmp.lt.s32.totalorder %s168_s3, %s168_s3 }
  0xe2   :  { %p3122_p1 = scmp.ne.s32.totalorder %s168_s3, %s3121_s10  ;;  %p3127_p3 = scmp.lt.s32.totalorder %s3121_s10, %s3121_s10 }
  0xe4   :  { %p3128_p4 = por %p3127_p3, %p3126_p2 }
  0xe6   :  { %p3129_p5 = pnand %p3128_p4, %p3122_p1 }
  0xe8   :  { %3132 = shalt.err (!%p3129_p5)
}
  0xe9   :  { %173 = dma.hbm_to_vmem [thread:$0]  %s4251_s12, 1024, %s168_s3, [#allocation21], %s3243_s18, %s3243_s18, %s3244_s19  }
  0xea   :  { %s3133_s22 = scalar_lea.hbm %s4252_s13, 1024 }
  0xeb   :  { %p3134_p6 = scmp.ne.s32.totalorder %s4252_s13, %s3133_s22  ;;  %p3137_p7 = scmp.lt.u32.totalorder %s3133_s22, %s4252_s13 }
  0xed   :  { %p3139_p8 = pnand %p3137_p7, %p3134_p6 }
  0xef   :  { %3142 = shalt.err (!%p3139_p8)
}
  0xf0   :  { %s3143_s21 = scalar_lea.vmem %s3520_s23, 1024  ;;  %p3148_p10 = scmp.lt.s32.totalorder %s3520_s23, %s3520_s23 }
  0xf1   :  { %p3144_p9 = scmp.ne.s32.totalorder %s3520_s23, %s3143_s21  ;;  %p3149_p11 = scmp.lt.s32.totalorder %s3143_s21, %s3143_s21 }
  0xf3   :  { %p3150_p12 = por %p3149_p11, %p3148_p10 }
  0xf5   :  { %p3151_p13 = pnand %p3150_p12, %p3144_p9 }
  0xf7   :  { %3154 = shalt.err (!%p3151_p13)
}
  0xf8   :  { %185 = dma.hbm_to_vmem [thread:$0]  %s4252_s13, 1024, %s3520_s23, [#allocation24], %s3243_s18, %s3243_s18, %s3244_s19  }
  0xf9   :  { %3221 = dma.done.wait [#allocation3], 1024  }
  0xfa   :  { %3222 = vsyncadd [#allocation3], 4294966272 }
  0xfb   :  { %3223 = dma.done.wait [#allocation6], 1040  }
  0xfc   :  { %3224 = vsyncadd [#allocation6], 4294966256 }
  0xfd   :  { %3225 = dma.done.wait [#allocation9], 1040  }
  0xfe   :  { %3226 = vsyncadd [#allocation9], 4294966256 }
  0xff   :  { %3227 = dma.done.wait [#allocation12], 32  }
 0x100   :  { %3228 = vsyncadd [#allocation12], 4294967264 }
 0x101   :  { %3229 = dma.done.wait [#allocation15], 2048  }
 0x102   :  { %3230 = vsyncadd [#allocation15], 4294965248 }
 0x103   :  { %3231 = dma.done.wait [#allocation18], 32  }
 0x104   :  { %3232 = vsyncadd [#allocation18], 4294967264 }
 0x105   :  { %3233 = dma.done.wait [#allocation21], 1040  }
 0x106   :  { %3234 = vsyncadd [#allocation21], 4294966256 }
 0x107   :  { %3235 = dma.done.wait [#allocation24], 1024  }
 0x108   :  { %3236 = vsyncadd [#allocation24], 4294966272  ;;  %v2727_v0 = vld [vmem:[#allocation5] sm:$0xff]   ;;  %v2728_v1 = vld [vmem:[#allocation5 + $0x8] sm:$0xff]   ;;  %s3257_s13 = smov [#allocation26]  }
 0x109   :  { %2450 = vmatprep.subr.bf16.mxu0 %v2727_v0  ;;  %v2729_v2 = vld [vmem:[#allocation5 + $0x10] sm:$0xff]   ;;  %v2730_v3 = vld [vmem:[#allocation5 + $0x18] sm:$0xff]   ;;  %v2735_v4 = vld [vmem:[#allocation2] sm:$0xff]   ;;  %s2063_s25 = sshll.u32 %s3257_s13, 4  ;;  %s2064_s25 = int_to_ptr.vmem [resolvable:$true] %s2063_s25 }
 0x10a   :  { %2451 = vmatpush3.bf16.msra.mxu0 %v2727_v0  ;;  %2466 = vmatprep.mubr.bf16.mxu0 %v2735_v4  ;;  %v2731_v5 = vld [vmem:[#allocation5 + $0x20] sm:$0xff]   ;;  %v2732_v6 = vld [vmem:[#allocation5 + $0x28] sm:$0xff]   ;;  %v2733_v9 = vld [vmem:[#allocation5 + $0x30] sm:$0xff]   ;;  %s3155_s26 = scalar_lea.vmem %s2064_s25, 2048  ;;  %p3160_p1 = scmp.lt.s32.totalorder %s2064_s25, %s2064_s25 }
 0x10b   :  { %2452 = vmatprep.subr.bf16.mxu0 %v2728_v1  ;;  %v2743_v7 = vld [vmem:[#allocation8] sm:$0xff]   ;;  %v2744_v8 = vld [vmem:[#allocation8 + $0x8] sm:$0xff]   ;;  %v2745_v10 = vld [vmem:[#allocation8 + $0x10] sm:$0xff]   ;;  %p3156_p0 = scmp.ne.s32.totalorder %s2064_s25, %s3155_s26  ;;  %p3161_p2 = scmp.lt.s32.totalorder %s3155_s26, %s3155_s26 }
 0x10c   :  { %2482 = vmatprep.subr.bf16.mxu1 %v2743_v7  ;;  %v2734_v11 = vld [vmem:[#allocation5 + $0x38] sm:$0xff]   ;;  %v2747_v13 = vld [vmem:[#allocation8 + $0x20] sm:$0xff]   ;;  %v2737_v15 = vld [vmem:[#allocation2 + $0x10] sm:$0xff]  }
 0x10d   :  { %2483 = vmatpush3.bf16.msra.mxu1 %v2743_v7  ;;  %v2746_v12 = vld [vmem:[#allocation8 + $0x18] sm:$0xff]   ;;  %v2736_v14 = vld [vmem:[#allocation2 + $0x8] sm:$0xff]   ;;  %v2741_v20 = vld [vmem:[#allocation2 + $0x30] sm:$0xff]   ;;  %p3162_p3 = por %p3161_p2, %p3160_p1 }
 0x10e   :  { %2453 = vmatpush3.bf16.msra.mxu0 %v2728_v1  ;;  %2484 = vmatprep.subr.bf16.mxu1 %v2744_v8  ;;  %v2748_v16 = vld [vmem:[#allocation8 + $0x28] sm:$0xff]   ;;  %v2738_v17 = vld [vmem:[#allocation2 + $0x18] sm:$0xff]   ;;  %v2739_v18 = vld [vmem:[#allocation2 + $0x20] sm:$0xff]  }
 0x10f   :  { %2454 = vmatprep.subr.bf16.mxu0 %v2729_v2  ;;  %v2740_v19 = vld [vmem:[#allocation2 + $0x28] sm:$0xff]   ;;  %v2742_v21 = vld [vmem:[#allocation2 + $0x38] sm:$0xff]   ;;  %v2752_v25 = vld [vmem:[#allocation14 + $0x8] sm:$0xff]   ;;  %p3163_p4 = pnand %p3162_p3, %p3156_p0 }
 0x110   :  { %v2749_v22 = vld [vmem:[#allocation8 + $0x30] sm:$0xff]   ;;  %v2750_v23 = vld [vmem:[#allocation8 + $0x38] sm:$0xff]   ;;  %v2751_v24 = vld [vmem:[#allocation14] sm:$0xff]  }
 0x111   :  { %2485 = vmatpush3.bf16.msra.mxu1 %v2744_v8  ;;  %v3557_v26 = vld [vmem:[#allocation14 + $0x10] sm:$0xff]   ;;  %v3560_v27 = vld [vmem:[#allocation14 + $0x18] sm:$0xff]   ;;  %v3564_v28 = vld [vmem:[#allocation14 + $0x20] sm:$0xff]  }
 0x112   :  { %2455 = vmatpush3.bf16.msra.mxu0 %v2729_v2  ;;  %2486 = vmatprep.subr.bf16.mxu1 %v2745_v10  ;;  %v3568_v29 = vld [vmem:[#allocation14 + $0x28] sm:$0xff]   ;;  %v3573_v30 = vld [vmem:[#allocation7] ss:$0 sm:$0xff] }
 0x113   :  { %2456 = vmatprep.subr.bf16.mxu0 %v2730_v3 }
 0x115   :  { %2487 = vmatpush3.bf16.msra.mxu1 %v2745_v10 }
 0x116   :  { %2457 = vmatpush3.bf16.msra.mxu0 %v2730_v3  ;;  %2488 = vmatprep.subr.bf16.mxu1 %v2746_v12 }
 0x117   :  { %2458 = vmatprep.subr.bf16.mxu0 %v2731_v5 }
 0x119   :  { %2489 = vmatpush3.bf16.msra.mxu1 %v2746_v12 }
 0x11a   :  { %2459 = vmatpush3.bf16.msra.mxu0 %v2731_v5  ;;  %2490 = vmatprep.subr.bf16.mxu1 %v2747_v13 }
 0x11b   :  { %2460 = vmatprep.subr.bf16.mxu0 %v2732_v6 }
 0x11d   :  { %2491 = vmatpush3.bf16.msra.mxu1 %v2747_v13 }
 0x11e   :  { %2461 = vmatpush3.bf16.msra.mxu0 %v2732_v6  ;;  %2492 = vmatprep.subr.bf16.mxu1 %v2748_v16 }
 0x11f   :  { %2462 = vmatprep.subr.bf16.mxu0 %v2733_v9 }
 0x121   :  { %2493 = vmatpush3.bf16.msra.mxu1 %v2748_v16 }
 0x122   :  { %2463 = vmatpush3.bf16.msra.mxu0 %v2733_v9  ;;  %2494 = vmatprep.subr.bf16.mxu1 %v2749_v22 }
 0x123   :  { %2464 = vmatprep.subr.bf16.mxu0 %v2734_v11 }
 0x125   :  { %2495 = vmatpush3.bf16.msra.mxu1 %v2749_v22 }
 0x126   :  { %2465 = vmatpush3.bf16.msra.mxu0 %v2734_v11  ;;  %2496 = vmatprep.subr.bf16.mxu1 %v2750_v23 }
 0x127   :  { %2514 = vmatprep.subr.bf16.mxu0 %v2751_v24 }
 0x129   :  { %2467 = vmatmul.mubr.bf16.vlgmr.msra.gmra.mrb[0].mxu0 %v2736_v14  ;;  %2497 = vmatpush3.bf16.msra.mxu1 %v2750_v23  ;;  %v2757_v23 = vld [vmem:[#allocation14 + $0x30] sm:$0xff]  }
 0x12a   :  { %2470 = vmatprep.mubr.bf16.mxu0 %v2737_v15  ;;  %2546 = vmatprep.subr.bf16.mxu1 %v2751_v24 }
 0x12b   :  { %2515 = vmatpush3.bf16.msra.mxu0 %v2751_v24 }
 0x12c   :  { %2516 = vmatprep.subr.bf16.mxu0 %v2752_v25 }
 0x12f   :  { %2517 = vmatpush3.bf16.msra.mxu0 %v2752_v25 }
 0x130   :  { %2518 = vmatprep.subr.bf16.mxu0 %v3557_v26 }
 0x131   :  { %2471 = vmatmul.mubr.bf16.gmra.mrb[4].mxu0 %v2738_v17 }
 0x132   :  { %2474 = vmatprep.mubr.bf16.mxu0 %v2739_v18 }
 0x133   :  { %2519 = vmatpush3.bf16.msra.mxu0 %v3557_v26 }
 0x134   :  { %2520 = vmatprep.subr.bf16.mxu0 %v3560_v27 }
 0x137   :  { %2521 = vmatpush3.bf16.msra.mxu0 %v3560_v27 }
 0x138   :  { %2522 = vmatprep.subr.bf16.mxu0 %v3564_v28 }
 0x139   :  { %2475 = vmatmul.mubr.bf16.gmra.mrb[8].mxu0 %v2740_v19 }
 0x13a   :  { %2478 = vmatprep.mubr.bf16.mxu0 %v2741_v20 }
 0x13b   :  { %2523 = vmatpush3.bf16.msra.mxu0 %v3564_v28 }
 0x13c   :  { %2524 = vmatprep.subr.bf16.mxu0 %v3568_v29 }
 0x13f   :  { %2525 = vmatpush3.bf16.msra.mxu0 %v3568_v29 }
 0x140   :  { %2526 = vmatprep.subr.bf16.mxu0 %v2757_v23 }
 0x141   :  { %2479 = vmatmul.mubr.bf16.gmra.mrb[12].mxu0 %v2742_v21 }
 0x143   :  { %2527 = vmatpush3.bf16.msra.mxu0 %v2757_v23 }
 0x1fc   :  { %v2468_v31 = vpop.f32.mrb[0].mxu0 }
 0x1fd   :  { %v407_v32 = vadd.f32 %v2468_v31, %v3573_v30  ;;  %v398_v33 = vpop.f32.mrb[1].mxu0 }
 0x1fe   :  { %v399_v34 = vadd.f32 %v3573_v30, %v398_v33  ;;  %v2469_v35 = vpop.f32.mrb[2].mxu0 }
 0x1ff   :  { %v3577_v36 = vmax.f32 %v407_v32, 0.0  ;;  %v410_v37 = vadd.f32 %v2469_v35, %v3573_v30  ;;  %v401_v38 = vpop.f32.mrb[3].mxu0 }
 0x200   :  { %v3580_v39 = vmax.f32 %v399_v34, 0.0  ;;  %v402_v40 = vadd.f32 %v3573_v30, %v401_v38 }
 0x201   :  { %1791 = vst [vmem:[#allocation26 + $0x10] sm:$0xff] %v3577_v36  ;;  %v3584_v41 = vmax.f32 %v410_v37, 0.0 }
 0x202   :  { %1789 = vst [vmem:[#allocation26] sm:$0xff] %v3580_v39  ;;  %v3587_v42 = vmax.f32 %v402_v40, 0.0 }
 0x203   :  { %1792 = vst [vmem:[#allocation26 + $0x18] sm:$0xff] %v3584_v41  ;;  %v3598_v47 = vpack.c.bf16 %v3584_v41, %v3577_v36 }
 0x204   :  { %1790 = vst [vmem:[#allocation26 + $0x8] sm:$0xff] %v3587_v42  ;;  %v2472_v43 = vpop.f32.mrb[4].mxu0  ;;  %v3593_v44 = vpack.c.bf16 %v3587_v42, %v3580_v39 }
 0x205   :  { %v423_v45 = vadd.f32 %v2472_v43, %v3573_v30  ;;  %v414_v46 = vpop.f32.mrb[5].mxu0 }
 0x206   :  { %v415_v48 = vadd.f32 %v3573_v30, %v414_v46  ;;  %v2473_v49 = vpop.f32.mrb[6].mxu0  ;;  %2498 = vmatprep.mubr.bf16.mxu1 %v3593_v44 }
 0x207   :  { %v3602_v50 = vmax.f32 %v423_v45, 0.0  ;;  %v426_v51 = vadd.f32 %v2473_v49, %v3573_v30  ;;  %v417_v52 = vpop.f32.mrb[7].mxu0  ;;  %2499 = vmatmul.mubr.bf16.vlgmr.msra.gmra.mrb[0].mxu1 %v3598_v47 }
 0x208   :  { %v3606_v53 = vmax.f32 %v415_v48, 0.0  ;;  %v418_v54 = vadd.f32 %v3573_v30, %v417_v52  ;;  %2547 = vmatpush3.bf16.msra.mxu1 %v2751_v24  ;;  %v2758_v24 = vld [vmem:[#allocation14 + $0x38] sm:$0xff]  }
 0x209   :  { %1795 = vst [vmem:[#allocation26 + $0x30] sm:$0xff] %v3602_v50  ;;  %v3610_v55 = vmax.f32 %v426_v51, 0.0  ;;  %2548 = vmatprep.subr.bf16.mxu1 %v2752_v25  ;;  %2528 = vmatprep.subr.bf16.mxu0 %v2758_v24 }
 0x20a   :  { %1793 = vst [vmem:[#allocation26 + $0x20] sm:$0xff] %v3606_v53  ;;  %v3613_v56 = vmax.f32 %v418_v54, 0.0  ;;  %2529 = vmatpush3.bf16.msra.mxu0 %v2758_v24 }
 0x20b   :  { %1796 = vst [vmem:[#allocation26 + $0x38] sm:$0xff] %v3610_v55  ;;  %v3624_v61 = vpack.c.bf16 %v3610_v55, %v3602_v50 }
 0x20c   :  { %1794 = vst [vmem:[#allocation26 + $0x28] sm:$0xff] %v3613_v56  ;;  %v2476_v57 = vpop.f32.mrb[8].mxu0  ;;  %v3619_v58 = vpack.c.bf16 %v3613_v56, %v3606_v53  ;;  %2549 = vmatpush3.bf16.msra.mxu1 %v2752_v25  ;;  %v2118_v25 = vld [vmem:[#allocation10] ss:$0 sm:$0xff] }
 0x20d   :  { %v439_v59 = vadd.f32 %v2476_v57, %v3573_v30  ;;  %v430_v60 = vpop.f32.mrb[9].mxu0  ;;  %2550 = vmatprep.subr.bf16.mxu1 %v3557_v26 }
 0x20e   :  { %v431_v62 = vadd.f32 %v3573_v30, %v430_v60  ;;  %v2477_v63 = vpop.f32.mrb[10].mxu0  ;;  %2502 = vmatprep.mubr.bf16.mxu1 %v3619_v58 }
 0x20f   :  { %v3629_v0 = vmax.f32 %v439_v59, 0.0  ;;  %v442_v1 = vadd.f32 %v2477_v63, %v3573_v30  ;;  %v433_v2 = vpop.f32.mrb[11].mxu0  ;;  %2503 = vmatmul.mubr.bf16.gmra.mrb[4].mxu1 %v3624_v61 }
 0x210   :  { %v3633_v3 = vmax.f32 %v431_v62, 0.0  ;;  %v434_v4 = vadd.f32 %v3573_v30, %v433_v2  ;;  %2551 = vmatpush3.bf16.msra.mxu1 %v3557_v26 }
 0x211   :  { %1799 = vst [vmem:[#allocation26 + $0x50] sm:$0xff] %v3629_v0  ;;  %v3638_v5 = vmax.f32 %v442_v1, 0.0  ;;  %2552 = vmatprep.subr.bf16.mxu1 %v3560_v27 }
 0x212   :  { %1797 = vst [vmem:[#allocation26 + $0x40] sm:$0xff] %v3633_v3  ;;  %v3642_v6 = vmax.f32 %v434_v4, 0.0 }
 0x213   :  { %1800 = vst [vmem:[#allocation26 + $0x58] sm:$0xff] %v3638_v5  ;;  %v3654_v11 = vpack.c.bf16 %v3638_v5, %v3629_v0 }
 0x214   :  { %1798 = vst [vmem:[#allocation26 + $0x48] sm:$0xff] %v3642_v6  ;;  %v2480_v7 = vpop.f32.mrb[12].mxu0  ;;  %v3648_v8 = vpack.c.bf16 %v3642_v6, %v3633_v3  ;;  %2553 = vmatpush3.bf16.msra.mxu1 %v3560_v27 }
 0x215   :  { %v455_v9 = vadd.f32 %v2480_v7, %v3573_v30  ;;  %v446_v10 = vpop.f32.mrb[13].mxu0  ;;  %2554 = vmatprep.subr.bf16.mxu1 %v3564_v28 }
 0x216   :  { %v447_v12 = vadd.f32 %v3573_v30, %v446_v10  ;;  %v2481_v13 = vpop.f32.mrb[14].mxu0  ;;  %2506 = vmatprep.mubr.bf16.mxu1 %v3648_v8 }
 0x217   :  { %v3659_v14 = vmax.f32 %v455_v9, 0.0  ;;  %v458_v15 = vadd.f32 %v2481_v13, %v3573_v30  ;;  %v449_v16 = vpop.f32.mrb[15].mxu0  ;;  %2507 = vmatmul.mubr.bf16.gmra.mrb[8].mxu1 %v3654_v11 }
 0x218   :  { %v3663_v17 = vmax.f32 %v447_v12, 0.0  ;;  %v450_v18 = vadd.f32 %v3573_v30, %v449_v16  ;;  %2555 = vmatpush3.bf16.msra.mxu1 %v3564_v28 }
 0x219   :  { %1803 = vst [vmem:[#allocation26 + $0x70] sm:$0xff] %v3659_v14  ;;  %v3668_v19 = vmax.f32 %v458_v15, 0.0  ;;  %2556 = vmatprep.subr.bf16.mxu1 %v3568_v29 }
 0x21a   :  { %4261 = vst [vmem:[#allocation39_spill] sm:$0xff] %v3663_v17  ;;  %1801 = vst [vmem:[#allocation26 + $0x60] sm:$0xff] %v3663_v17  ;;  %v3672_v20 = vmax.f32 %v450_v18, 0.0 }
 0x21b   :  { %1804 = vst [vmem:[#allocation26 + $0x78] sm:$0xff] %v3668_v19  ;;  %v3683_v22 = vpack.c.bf16 %v3668_v19, %v3659_v14 }
 0x21c   :  { %4262 = vst [vmem:[#allocation40_spill] sm:$0xff] %v3672_v20  ;;  %1802 = vst [vmem:[#allocation26 + $0x68] sm:$0xff] %v3672_v20  ;;  %v3678_v21 = vpack.c.bf16 %v3672_v20, %v3663_v17  ;;  %2557 = vmatpush3.bf16.msra.mxu1 %v3568_v29 }
 0x21d   :  { %2558 = vmatprep.subr.bf16.mxu1 %v2757_v23 }
 0x21e   :  { %2510 = vmatprep.mubr.bf16.mxu1 %v3678_v21 }
 0x21f   :  { %2511 = vmatmul.mubr.bf16.gmra.mrb[12].mxu1 %v3683_v22 }
 0x220   :  { %2559 = vmatpush3.bf16.msra.mxu1 %v2757_v23 }
 0x221   :  { %2560 = vmatprep.subr.bf16.mxu1 %v2758_v24 }
 0x224   :  { %2561 = vmatpush3.bf16.msra.mxu1 %v2758_v24 }
 0x2da   :  { %v2500_v26 = vpop.f32.mrb[0].mxu1 }
 0x2db   :  { %v590_v27 = vpop.f32.mrb[1].mxu1  ;;  %v3689_v30 = vadd.f32 %v2500_v26, %v2118_v25 }
 0x2dc   :  { %v3687_v28 = vadd.f32 %v2118_v25, %v590_v27  ;;  %v2501_v29 = vpop.f32.mrb[2].mxu1 }
 0x2dd   :  { %v3691_v31 = vadd.f32 %v2501_v29, %v2118_v25  ;;  %v593_v32 = vpop.f32.mrb[3].mxu1  ;;  %v655_v38 = vmax.f32 %v3689_v30, 0.0 }
 0x2de   :  { %v3693_v33 = vadd.f32 %v2118_v25, %v593_v32  ;;  %v653_v35 = vmax.f32 %v3687_v28, 0.0 }
 0x2df   :  { %v656_v34 = vmax.f32 %v3691_v31, 0.0 }
 0x2e0   :  { %v654_v37 = vmax.f32 %v3693_v33, 0.0 }
 0x2e1   :  { %v688_v45 = vpack.c.bf16 %v656_v34, %v655_v38 }
 0x2e2   :  { %v687_v40 = vpack.c.bf16 %v654_v37, %v653_v35  ;;  %v2504_v43 = vpop.f32.mrb[4].mxu1 }
 0x2e3   :  { %v606_v46 = vpop.f32.mrb[5].mxu1  ;;  %v3709_v51 = vadd.f32 %v2504_v43, %v2118_v25 }
 0x2e4   :  { %v3707_v48 = vadd.f32 %v2118_v25, %v606_v46  ;;  %v2505_v49 = vpop.f32.mrb[6].mxu1  ;;  %2530 = vmatprep.mubr.bf16.mxu0 %v687_v40 }
 0x2e5   :  { %v3711_v52 = vadd.f32 %v2505_v49, %v2118_v25  ;;  %v609_v54 = vpop.f32.mrb[7].mxu1  ;;  %2531 = vmatmul.mubr.bf16.vlgmr.msra.gmra.mrb[16].mxu0 %v688_v45  ;;  %v659_v63 = vmax.f32 %v3709_v51, 0.0 }
 0x2e6   :  { %v3713_v57 = vadd.f32 %v2118_v25, %v609_v54  ;;  %v657_v60 = vmax.f32 %v3707_v48, 0.0 }
 0x2e7   :  { %v660_v59 = vmax.f32 %v3711_v52, 0.0 }
 0x2e8   :  { %v658_v62 = vmax.f32 %v3713_v57, 0.0 }
 0x2e9   :  { %v690_v4 = vpack.c.bf16 %v660_v59, %v659_v63 }
 0x2ea   :  { %v689_v1 = vpack.c.bf16 %v658_v62, %v657_v60  ;;  %v2508_v2 = vpop.f32.mrb[8].mxu1 }
 0x2eb   :  { %v622_v7 = vpop.f32.mrb[9].mxu1  ;;  %v3725_v12 = vadd.f32 %v2508_v2, %v2118_v25 }
 0x2ec   :  { %v3723_v9 = vadd.f32 %v2118_v25, %v622_v7  ;;  %v2509_v10 = vpop.f32.mrb[10].mxu1  ;;  %2534 = vmatprep.mubr.bf16.mxu0 %v689_v1 }
 0x2ed   :  { %v3727_v13 = vadd.f32 %v2509_v10, %v2118_v25  ;;  %v625_v15 = vpop.f32.mrb[11].mxu1  ;;  %2535 = vmatmul.mubr.bf16.gmra.mrb[20].mxu0 %v690_v4  ;;  %v663_v26 = vmax.f32 %v3725_v12, 0.0  ;;  %v2759_v10 = vld [vmem:[#allocation16] sm:$0xff]   ;;  %v2760_v12 = vld [vmem:[#allocation16 + $0x8] sm:$0xff]  }
 0x2ee   :  { %v3729_v16 = vadd.f32 %v2118_v25, %v625_v15  ;;  %v661_v23 = vmax.f32 %v3723_v9, 0.0  ;;  %2578 = vmatprep.subr.bf16.mxu0 %v2759_v10 }
 0x2ef   :  { %v664_v18 = vmax.f32 %v3727_v13, 0.0  ;;  %2579 = vmatpush3.bf16.msra.mxu0 %v2759_v10 }
 0x2f0   :  { %v662_v24 = vmax.f32 %v3729_v16, 0.0  ;;  %2580 = vmatprep.subr.bf16.mxu0 %v2760_v12 }
 0x2f1   :  { %v692_v32 = vpack.c.bf16 %v664_v18, %v663_v26 }
 0x2f2   :  { %v691_v27 = vpack.c.bf16 %v662_v24, %v661_v23  ;;  %v2512_v29 = vpop.f32.mrb[12].mxu1 }
 0x2f3   :  { %v638_v40 = vpop.f32.mrb[13].mxu1  ;;  %v3741_v46 = vadd.f32 %v2512_v29, %v2118_v25  ;;  %2581 = vmatpush3.bf16.msra.mxu0 %v2760_v12 }
 0x2f4   :  { %v3739_v43 = vadd.f32 %v2118_v25, %v638_v40  ;;  %v2513_v45 = vpop.f32.mrb[14].mxu1  ;;  %2538 = vmatprep.mubr.bf16.mxu0 %v691_v27 }
 0x2f5   :  { %v3743_v48 = vadd.f32 %v2513_v45, %v2118_v25  ;;  %v641_v49 = vpop.f32.mrb[15].mxu1  ;;  %2539 = vmatmul.mubr.bf16.gmra.mrb[24].mxu0 %v692_v32  ;;  %v667_v4 = vmax.f32 %v3741_v46, 0.0 }
 0x2f6   :  { %v3745_v51 = vadd.f32 %v2118_v25, %v641_v49  ;;  %v665_v1 = vmax.f32 %v3739_v43, 0.0 }
 0x2f7   :  { %v668_v54 = vmax.f32 %v3743_v48, 0.0 }
 0x2f8   :  { %v666_v2 = vmax.f32 %v3745_v51, 0.0  ;;  %v2762_v51 = vld [vmem:[#allocation16 + $0x18] sm:$0xff]  }
 0x2f9   :  { %v694_v9 = vpack.c.bf16 %v668_v54, %v667_v4 }
 0x2fa   :  { %v693_v7 = vpack.c.bf16 %v666_v2, %v665_v1 }
 0x2fc   :  { %2542 = vmatprep.mubr.bf16.mxu0 %v693_v7 }
 0x2fd   :  { %2543 = vmatmul.mubr.bf16.gmra.mrb[28].mxu0 %v694_v9 }
 0x3b8   :  { %v2532_v25 = vpop.f32.mrb[16].mxu0 }
 0x3b9   :  { %v777_v15 = vpop.f32.mrb[17].mxu0  ;;  %v3761_v32 = vsub.f32 %v655_v38, %v2532_v25 }
 0x3ba   :  { %v3757_v27 = vsub.f32 %v653_v35, %v777_v15  ;;  %v2533_v29 = vpop.f32.mrb[18].mxu0 }
 0x3bb   :  { %v3765_v40 = vsub.f32 %v656_v34, %v2533_v29  ;;  %v780_v43 = vpop.f32.mrb[19].mxu0  ;;  %v858_v35 = vmul.f32 %v3761_v32, %v3761_v32 }
 0x3bc   :  { %v3769_v45 = vsub.f32 %v654_v37, %v780_v43  ;;  %v856_v28 = vmul.f32 %v3757_v27, %v3757_v27 }
 0x3bd   :  { %v859_v46 = vmul.f32 %v3765_v40, %v3765_v40 }
 0x3be   :  { %v857_v30 = vmul.f32 %v3769_v45, %v3769_v45 }
 0x3bf   :  { %v873_v38 = vpack.c.bf16 %v859_v46, %v858_v35 }
 0x3c0   :  { %v2536_v31 = vpop.f32.mrb[20].mxu0  ;;  %v872_v34 = vpack.c.bf16 %v857_v30, %v856_v28 }
 0x3c1   :  { %v793_v49 = vpop.f32.mrb[21].mxu0  ;;  %v3781_v37 = vsub.f32 %v659_v63, %v2536_v31 }
 0x3c2   :  { %v3779_v7 = vsub.f32 %v657_v60, %v793_v49  ;;  %v2537_v33 = vpop.f32.mrb[22].mxu0  ;;  %2562 = vmatprep.mubr.bf16.mxu1 %v872_v34 }
 0x3c3   :  { %v3785_v9 = vsub.f32 %v660_v59, %v2537_v33  ;;  %v796_v10 = vpop.f32.mrb[23].mxu0  ;;  %2563 = vmatmul.mubr.bf16.vlgmr.msra.gmra.mrb[16].mxu1 %v873_v38  ;;  %v862_v52 = vmul.f32 %v3781_v37, %v3781_v37 }
 0x3c4   :  { %v3789_v12 = vsub.f32 %v658_v62, %v796_v10  ;;  %v860_v60 = vmul.f32 %v3779_v7, %v3779_v7 }
 0x3c5   :  { %v863_v25 = vmul.f32 %v3785_v9, %v3785_v9 }
 0x3c6   :  { %v861_v63 = vmul.f32 %v3789_v12, %v3789_v12 }
 0x3c7   :  { %v875_v43 = vpack.c.bf16 %v863_v25, %v862_v52 }
 0x3c8   :  { %v2540_v59 = vpop.f32.mrb[24].mxu0  ;;  %v874_v15 = vpack.c.bf16 %v861_v63, %v860_v60 }
 0x3c9   :  { %v809_v29 = vpop.f32.mrb[25].mxu0  ;;  %v3801_v62 = vsub.f32 %v663_v26, %v2540_v59  ;;  %v2761_v59 = vld [vmem:[#allocation16 + $0x10] sm:$0xff]  }
 0x3ca   :  { %v3799_v46 = vsub.f32 %v661_v23, %v809_v29  ;;  %v2541_v57 = vpop.f32.mrb[26].mxu0  ;;  %2566 = vmatprep.mubr.bf16.mxu1 %v874_v15  ;;  %2582 = vmatprep.subr.bf16.mxu0 %v2761_v59  ;;  %v2764_v15 = vld [vmem:[#allocation16 + $0x28] sm:$0xff]   ;;  %v2765_v29 = vld [vmem:[#allocation16 + $0x30] sm:$0xff]  }
 0x3cb   :  { %v3805_v28 = vsub.f32 %v664_v18, %v2541_v57  ;;  %v812_v30 = vpop.f32.mrb[27].mxu0  ;;  %2567 = vmatmul.mubr.bf16.gmra.mrb[20].mxu1 %v875_v43  ;;  %v866_v13 = vmul.f32 %v3801_v62, %v3801_v62  ;;  %2583 = vmatpush3.bf16.msra.mxu0 %v2761_v59  ;;  %v2766_v43 = vld [vmem:[#allocation16 + $0x38] sm:$0xff]   ;;  %v3839_v57 = vld [vmem:[#allocation22] sm:$0xff]  }
 0x3cc   :  { %v3809_v35 = vsub.f32 %v662_v24, %v812_v30  ;;  %v864_v23 = vmul.f32 %v3799_v46, %v3799_v46  ;;  %2584 = vmatprep.subr.bf16.mxu0 %v2762_v51  ;;  %v3841_v30 = vld [vmem:[#allocation22 + $0x8] sm:$0xff]   ;;  %2610 = vmatprep.subr.bf16.mxu1 %v3839_v57 }
 0x3cd   :  { %v867_v31 = vmul.f32 %v3805_v28, %v3805_v28  ;;  %2611 = vmatpush3.bf16.msra.mxu1 %v3839_v57 }
 0x3ce   :  { %v865_v26 = vmul.f32 %v3809_v35, %v3809_v35  ;;  %2612 = vmatprep.subr.bf16.mxu1 %v3841_v30 }
 0x3cf   :  { %v877_v49 = vpack.c.bf16 %v867_v31, %v866_v13  ;;  %2585 = vmatpush3.bf16.msra.mxu0 %v2762_v51  ;;  %v3847_v31 = vld [vmem:[#allocation22 + $0x10] sm:$0xff]   ;;  %v3859_v13 = vld [vmem:[#allocation22 + $0x28] sm:$0xff]  }
 0x3d0   :  { %v2544_v18 = vpop.f32.mrb[28].mxu0  ;;  %v876_v34 = vpack.c.bf16 %v865_v26, %v864_v23  ;;  %v3851_v23 = vld [vmem:[#allocation22 + $0x18] sm:$0xff]   ;;  %v3855_v26 = vld [vmem:[#allocation22 + $0x20] sm:$0xff]  }
 0x3d1   :  { %v825_v38 = vpop.f32.mrb[29].mxu0  ;;  %v3821_v24 = vsub.f32 %v667_v4, %v2544_v18  ;;  %2613 = vmatpush3.bf16.msra.mxu1 %v3841_v30 }
 0x3d2   :  { %v3819_v33 = vsub.f32 %v665_v1, %v825_v38  ;;  %v2545_v16 = vpop.f32.mrb[30].mxu0  ;;  %2570 = vmatprep.mubr.bf16.mxu1 %v876_v34  ;;  %2614 = vmatprep.subr.bf16.mxu1 %v3847_v31 }
 0x3d3   :  { %v3825_v10 = vsub.f32 %v668_v54, %v2545_v16  ;;  %v828_v25 = vpop.f32.mrb[31].mxu0  ;;  %2571 = vmatmul.mubr.bf16.gmra.mrb[24].mxu1 %v877_v49  ;;  %v870_v48 = vmul.f32 %v3821_v24, %v3821_v24 }
 0x3d4   :  { %v3829_v60 = vsub.f32 %v666_v2, %v828_v25  ;;  %v868_v1 = vmul.f32 %v3819_v33, %v3819_v33  ;;  %v2763_v2 = vld [vmem:[#allocation16 + $0x20] sm:$0xff]  }
 0x3d5   :  { %v871_v63 = vmul.f32 %v3825_v10, %v3825_v10  ;;  %2586 = vmatprep.subr.bf16.mxu0 %v2763_v2  ;;  %2615 = vmatpush3.bf16.msra.mxu1 %v3847_v31 }
 0x3d6   :  { %v869_v4 = vmul.f32 %v3829_v60, %v3829_v60  ;;  %2587 = vmatpush3.bf16.msra.mxu0 %v2763_v2  ;;  %2616 = vmatprep.subr.bf16.mxu1 %v3851_v23 }
 0x3d7   :  { %v879_v52 = vpack.c.bf16 %v871_v63, %v870_v48  ;;  %2588 = vmatprep.subr.bf16.mxu0 %v2764_v15 }
 0x3d8   :  { %v878_v54 = vpack.c.bf16 %v869_v4, %v868_v1 }
 0x3d9   :  { %2617 = vmatpush3.bf16.msra.mxu1 %v3851_v23 }
 0x3da   :  { %2574 = vmatprep.mubr.bf16.mxu1 %v878_v54  ;;  %2589 = vmatpush3.bf16.msra.mxu0 %v2764_v15 }
 0x3db   :  { %2575 = vmatmul.mubr.bf16.gmra.mrb[28].mxu1 %v879_v52  ;;  %2590 = vmatprep.subr.bf16.mxu0 %v2765_v29 }
 0x3dc   :  { %2618 = vmatprep.subr.bf16.mxu1 %v3855_v26 }
 0x3dd   :  { %2619 = vmatpush3.bf16.msra.mxu1 %v3855_v26 }
 0x3de   :  { %2591 = vmatpush3.bf16.msra.mxu0 %v2765_v29  ;;  %2620 = vmatprep.subr.bf16.mxu1 %v3859_v13 }
 0x3df   :  { %2592 = vmatprep.subr.bf16.mxu0 %v2766_v43 }
 0x3e1   :  { %2621 = vmatpush3.bf16.msra.mxu1 %v3859_v13 }
 0x3e2   :  { %2593 = vmatpush3.bf16.msra.mxu0 %v2766_v43 }
 0x3e3   :  { %2642 = vmatprep.subr.bf16.mxu0 %v3839_v57 }
 0x496   :  { %v2564_v18 = vpop.f32.mrb[16].mxu1 }
 0x497   :  { %v979_v34 = vmax.f32 %v2564_v18, 0.0  ;;  %v914_v38 = vpop.f32.mrb[17].mxu1 }
 0x498   :  { %v977_v49 = vmax.f32 %v914_v38, 0.0  ;;  %v2565_v16 = vpop.f32.mrb[18].mxu1 }
 0x499   :  { %v995_v25 = vadd.f32 1e-05, %v979_v34  ;;  %v980_v63 = vmax.f32 %v2565_v16, 0.0  ;;  %v917_v1 = vpop.f32.mrb[19].mxu1 }
 0x49a   :  { %v993_v4 = vadd.f32 1e-05, %v977_v49  ;;  %v978_v48 = vmax.f32 %v917_v1, 0.0 }
 0x49b   :  { %2783 = vrsqrt.f32 %v995_v25  ;;  %v996_v54 = vadd.f32 1e-05, %v980_v63  ;;  %v3864_v63 = vld [vmem:[#allocation11] ss:$0 sm:$0xff] }
 0x49c   :  { %2785 = vrsqrt.f32 %v993_v4  ;;  %v994_v52 = vadd.f32 1e-05, %v978_v48 }
 0x49d   :  { %2787 = vrsqrt.f32 %v996_v54 }
 0x49e   :  { %2789 = vrsqrt.f32 %v994_v52  ;;  %v2568_v59 = vpop.f32.mrb[20].mxu1 }
 0x49f   :  { %v983_v51 = vmax.f32 %v2568_v59, 0.0  ;;  %v930_v2 = vpop.f32.mrb[21].mxu1 }
 0x4a0   :  { %v981_v15 = vmax.f32 %v930_v2, 0.0  ;;  %v2569_v29 = vpop.f32.mrb[22].mxu1 }
 0x4a1   :  { %v999_v43 = vadd.f32 1e-05, %v983_v51  ;;  %v984_v18 = vmax.f32 %v2569_v29, 0.0  ;;  %v933_v38 = vpop.f32.mrb[23].mxu1 }
 0x4a2   :  { %v997_v20 = vadd.f32 1e-05, %v981_v15  ;;  %v982_v34 = vmax.f32 %v933_v38, 0.0 }
 0x4a3   :  { %2791 = vrsqrt.f32 %v999_v43  ;;  %v1000_v16 = vadd.f32 1e-05, %v984_v18 }
 0x4a4   :  { %2793 = vrsqrt.f32 %v997_v20  ;;  %v998_v49 = vadd.f32 1e-05, %v982_v34 }
 0x4a5   :  { %v2784_v25 = vpop.eup %2783  ;;  %2795 = vrsqrt.f32 %v1000_v16  ;;  %v3870_v16 = vld [vmem:[#allocation13] ss:$0 sm:$0xff] }
 0x4a6   :  { %v2786_v1 = vpop.eup %2785  ;;  %v1027_v4 = vmul.f32 %v2784_v25, %v3761_v32  ;;  %2797 = vrsqrt.f32 %v998_v49  ;;  %v2572_v48 = vpop.f32.mrb[24].mxu1 }
 0x4a7   :  { %v2788_v54 = vpop.eup %2787  ;;  %v987_v52 = vmax.f32 %v2572_v48, 0.0  ;;  %v946_v59 = vpop.f32.mrb[25].mxu1  ;;  %v1025_v51 = vmul.f32 %v2786_v1, %v3757_v27 }
 0x4a8   :  { %v2790_v2 = vpop.eup %2789  ;;  %v1049_v15 = vmul.f32 %v3864_v63, %v1027_v4  ;;  %v1028_v20 = vmul.f32 %v2788_v54, %v3765_v40  ;;  %v985_v29 = vmax.f32 %v946_v59, 0.0  ;;  %v2573_v43 = vpop.f32.mrb[26].mxu1 }
 0x4a9   :  { %v1003_v18 = vadd.f32 1e-05, %v987_v52  ;;  %v988_v38 = vmax.f32 %v2573_v43, 0.0  ;;  %v949_v34 = vpop.f32.mrb[27].mxu1  ;;  %v1026_v32 = vmul.f32 %v2790_v2, %v3769_v45  ;;  %v1047_v49 = vmul.f32 %v3864_v63, %v1025_v51 }
 0x4aa   :  { %v1050_v25 = vmul.f32 %v3864_v63, %v1028_v20  ;;  %v1001_v48 = vadd.f32 1e-05, %v985_v29  ;;  %v986_v27 = vmax.f32 %v949_v34, 0.0  ;;  %v1071_v54 = vadd.f32 %v3870_v16, %v1049_v15 }
 0x4ab   :  { %2799 = vrsqrt.f32 %v1003_v18  ;;  %v1004_v1 = vadd.f32 1e-05, %v988_v38  ;;  %v1048_v4 = vmul.f32 %v3864_v63, %v1026_v32  ;;  %v1069_v45 = vadd.f32 %v3870_v16, %v1047_v49 }
 0x4ac   :  { %2801 = vrsqrt.f32 %v1001_v48  ;;  %v1002_v40 = vadd.f32 1e-05, %v986_v27  ;;  %v1072_v52 = vadd.f32 %v3870_v16, %v1050_v25 }
 0x4ad   :  { %v2792_v59 = vpop.eup %2791  ;;  %2803 = vrsqrt.f32 %v1004_v1  ;;  %v1070_v51 = vadd.f32 %v3870_v16, %v1048_v4 }
 0x4ae   :  { %v2794_v2 = vpop.eup %2793  ;;  %2805 = vrsqrt.f32 %v1002_v40  ;;  %v2576_v20 = vpop.f32.mrb[28].mxu1  ;;  %v1102_v29 = vpack.c.bf16 %v1072_v52, %v1071_v54  ;;  %v1031_v43 = vmul.f32 %v2792_v59, %v3781_v37 }
 0x4af   :  { %v2796_v18 = vpop.eup %2795  ;;  %v991_v38 = vmax.f32 %v2576_v20, 0.0  ;;  %v962_v34 = vpop.f32.mrb[29].mxu1  ;;  %v1101_v32 = vpack.c.bf16 %v1070_v51, %v1069_v45  ;;  %v1029_v15 = vmul.f32 %v2794_v2, %v3779_v7 }
 0x4b0   :  { %v2798_v48 = vpop.eup %2797  ;;  %v989_v25 = vmax.f32 %v962_v34, 0.0  ;;  %v2577_v27 = vpop.f32.mrb[30].mxu1  ;;  %v1032_v1 = vmul.f32 %v2796_v18, %v3785_v9  ;;  %v1053_v49 = vmul.f32 %v3864_v63, %v1031_v43 }
 0x4b1   :  { %v1007_v4 = vadd.f32 1e-05, %v991_v38  ;;  %v992_v17 = vmax.f32 %v2577_v27, 0.0  ;;  %v965_v40 = vpop.f32.mrb[31].mxu1  ;;  %2594 = vmatprep.mubr.bf16.mxu0 %v1101_v32  ;;  %v1030_v54 = vmul.f32 %v2798_v48, %v3789_v12  ;;  %v1051_v37 = vmul.f32 %v3864_v63, %v1029_v15 }
 0x4b2   :  { %v1005_v52 = vadd.f32 1e-05, %v989_v25  ;;  %v990_v59 = vmax.f32 %v965_v40, 0.0  ;;  %2595 = vmatmul.mubr.bf16.vlgmr.msra.gmra.mrb[32].mxu0 %v1102_v29  ;;  %v1054_v7 = vmul.f32 %v3864_v63, %v1032_v1  ;;  %v1075_v2 = vadd.f32 %v3870_v16, %v1053_v49 }
 0x4b3   :  { %2807 = vrsqrt.f32 %v1007_v4  ;;  %v1008_v45 = vadd.f32 1e-05, %v992_v17  ;;  %v1052_v51 = vmul.f32 %v3864_v63, %v1030_v54  ;;  %2643 = vmatpush3.bf16.msra.mxu0 %v3839_v57  ;;  %v1073_v29 = vadd.f32 %v3870_v16, %v1051_v37 }
 0x4b4   :  { %2809 = vrsqrt.f32 %v1005_v52  ;;  %v1006_v9 = vadd.f32 1e-05, %v990_v59  ;;  %v1076_v20 = vadd.f32 %v3870_v16, %v1054_v7  ;;  %2644 = vmatprep.subr.bf16.mxu0 %v3841_v30 }
 0x4b5   :  { %v2800_v12 = vpop.eup %2799  ;;  %2811 = vrsqrt.f32 %v1008_v45  ;;  %v1074_v43 = vadd.f32 %v3870_v16, %v1052_v51 }
 0x4b6   :  { %v2802_v18 = vpop.eup %2801  ;;  %2813 = vrsqrt.f32 %v1006_v9  ;;  %v1104_v17 = vpack.c.bf16 %v1076_v20, %v1075_v2  ;;  %v1035_v38 = vmul.f32 %v2800_v12, %v3801_v62 }
 0x4b7   :  { %v2804_v57 = vpop.eup %2803  ;;  %v1103_v34 = vpack.c.bf16 %v1074_v43, %v1073_v29  ;;  %v1033_v32 = vmul.f32 %v2802_v18, %v3799_v46  ;;  %2645 = vmatpush3.bf16.msra.mxu0 %v3841_v30  ;;  %v2773_v43 = vld [vmem:[#allocation22 + $0x30] sm:$0xff]   ;;  %v3927_v18 = vld [vmem:[#allocation17] ss:$0 sm:$0xff] }
 0x4b8   :  { %v2806_v15 = vpop.eup %2805  ;;  %v1036_v48 = vmul.f32 %v2804_v57, %v3805_v28  ;;  %v1057_v25 = vmul.f32 %v3864_v63, %v1035_v38  ;;  %2646 = vmatprep.subr.bf16.mxu0 %v3847_v31  ;;  %2622 = vmatprep.subr.bf16.mxu1 %v2773_v43 }
 0x4b9   :  { %2598 = vmatprep.mubr.bf16.mxu0 %v1103_v34  ;;  %v1034_v27 = vmul.f32 %v2806_v15, %v3809_v35  ;;  %v1055_v1 = vmul.f32 %v3864_v63, %v1033_v32  ;;  %2623 = vmatpush3.bf16.msra.mxu1 %v2773_v43 }
 0x4ba   :  { %2599 = vmatmul.mubr.bf16.gmra.mrb[36].mxu0 %v1104_v17  ;;  %v1058_v62 = vmul.f32 %v3864_v63, %v1036_v48  ;;  %v1079_v46 = vadd.f32 %v3870_v16, %v1057_v25 }
 0x4bb   :  { %v1056_v49 = vmul.f32 %v3864_v63, %v1034_v27  ;;  %2647 = vmatpush3.bf16.msra.mxu0 %v3847_v31  ;;  %v1077_v4 = vadd.f32 %v3870_v16, %v1055_v1 }
 0x4bc   :  { %v1080_v28 = vadd.f32 %v3870_v16, %v1058_v62  ;;  %2648 = vmatprep.subr.bf16.mxu0 %v3851_v23 }
 0x4bd   :  { %v2808_v30 = vpop.eup %2807  ;;  %v1078_v35 = vadd.f32 %v3870_v16, %v1056_v49 }
 0x4be   :  { %v2810_v40 = vpop.eup %2809  ;;  %v1106_v54 = vpack.c.bf16 %v1080_v28, %v1079_v46  ;;  %v1039_v37 = vmul.f32 %v2808_v30, %v3821_v24  ;;  %v2776_v30 = vld [vmem:[#allocation23 + $0x8] sm:$0xff]  }
 0x4bf   :  { %v2812_v52 = vpop.eup %2811  ;;  %v1105_v59 = vpack.c.bf16 %v1078_v35, %v1077_v4  ;;  %v1037_v7 = vmul.f32 %v2810_v40, %v3819_v33  ;;  %2649 = vmatpush3.bf16.msra.mxu0 %v3851_v23 }
 0x4c0   :  { %v2814_v31 = vpop.eup %2813  ;;  %v1040_v45 = vmul.f32 %v2812_v52, %v3825_v10  ;;  %v1061_v51 = vmul.f32 %v3864_v63, %v1039_v37  ;;  %2650 = vmatprep.subr.bf16.mxu0 %v3855_v26 }
 0x4c1   :  { %2602 = vmatprep.mubr.bf16.mxu0 %v1105_v59  ;;  %v1038_v9 = vmul.f32 %v2814_v31, %v3829_v60  ;;  %v1059_v2 = vmul.f32 %v3864_v63, %v1037_v7  ;;  %v2777_v7 = vld [vmem:[#allocation23 + $0x10] sm:$0xff]  }
 0x4c2   :  { %2603 = vmatmul.mubr.bf16.gmra.mrb[40].mxu0 %v1106_v54  ;;  %v1062_v24 = vmul.f32 %v3864_v63, %v1040_v45  ;;  %v1083_v33 = vadd.f32 %v3870_v16, %v1061_v51 }
 0x4c3   :  { %v1060_v20 = vmul.f32 %v3864_v63, %v1038_v9  ;;  %2651 = vmatpush3.bf16.msra.mxu0 %v3855_v26  ;;  %v1081_v23 = vadd.f32 %v3870_v16, %v1059_v2  ;;  %v2774_v26 = vld [vmem:[#allocation22 + $0x38] sm:$0xff]   ;;  %v2775_v63 = vld [vmem:[#allocation23] sm:$0xff]  }
 0x4c4   :  { %v1084_v10 = vadd.f32 %v3870_v16, %v1062_v24  ;;  %2652 = vmatprep.subr.bf16.mxu0 %v3859_v13  ;;  %2624 = vmatprep.subr.bf16.mxu1 %v2774_v26 }
 0x4c5   :  { %v1082_v12 = vadd.f32 %v3870_v16, %v1060_v20  ;;  %2625 = vmatpush3.bf16.msra.mxu1 %v2774_v26 }
 0x4c6   :  { %v1108_v60 = vpack.c.bf16 %v1084_v10, %v1083_v33  ;;  %2674 = vmatprep.subr.bf16.mxu1 %v2775_v63  ;;  %v2778_v33 = vld [vmem:[#allocation23 + $0x18] sm:$0xff]  }
 0x4c7   :  { %v1107_v29 = vpack.c.bf16 %v1082_v12, %v1081_v23  ;;  %2653 = vmatpush3.bf16.msra.mxu0 %v3859_v13 }
 0x4c8   :  { %2654 = vmatprep.subr.bf16.mxu0 %v2773_v43 }
 0x4c9   :  { %2606 = vmatprep.mubr.bf16.mxu0 %v1107_v29 }
 0x4ca   :  { %2607 = vmatmul.mubr.bf16.gmra.mrb[44].mxu0 %v1108_v60 }
 0x4cb   :  { %2655 = vmatpush3.bf16.msra.mxu0 %v2773_v43 }
 0x4cc   :  { %2656 = vmatprep.subr.bf16.mxu0 %v2774_v26 }
 0x4cf   :  { %2657 = vmatpush3.bf16.msra.mxu0 %v2774_v26 }
 0x585   :  { %v2596_v16 = vpop.f32.mrb[32].mxu0 }
 0x586   :  { %v1198_v17 = vpop.f32.mrb[33].mxu0  ;;  %v3933_v57 = vadd.f32 %v2596_v16, %v3927_v18 }
 0x587   :  { %v3930_v13 = vadd.f32 %v3927_v18, %v1198_v17  ;;  %v2597_v38 = vpop.f32.mrb[34].mxu0 }
 0x588   :  { %v3936_v34 = vadd.f32 %v2597_v38, %v3927_v18  ;;  %v1201_v32 = vpop.f32.mrb[35].mxu0  ;;  %v1263_v1 = vmax.f32 %v3933_v57, 0.0 }
 0x589   :  { %v3939_v15 = vadd.f32 %v3927_v18, %v1201_v32  ;;  %v1261_v25 = vmax.f32 %v3930_v13, 0.0 }
 0x58a   :  { %v1264_v48 = vmax.f32 %v3936_v34, 0.0 }
 0x58b   :  { %v1262_v27 = vmax.f32 %v3939_v15, 0.0 }
 0x58c   :  { %v1296_v46 = vpack.c.bf16 %v1264_v48, %v1263_v1 }
 0x58d   :  { %v1295_v62 = vpack.c.bf16 %v1262_v27, %v1261_v25  ;;  %v2600_v49 = vpop.f32.mrb[36].mxu0 }
 0x58e   :  { %v1214_v28 = vpop.f32.mrb[37].mxu0  ;;  %v3957_v40 = vadd.f32 %v2600_v49, %v3927_v18 }
 0x58f   :  { %v3954_v4 = vadd.f32 %v3927_v18, %v1214_v28  ;;  %v2601_v35 = vpop.f32.mrb[38].mxu0  ;;  %2626 = vmatprep.mubr.bf16.mxu1 %v1295_v62  ;;  %v2780_v28 = vld [vmem:[#allocation23 + $0x28] sm:$0xff]  }
 0x590   :  { %v3960_v54 = vadd.f32 %v2601_v35, %v3927_v18  ;;  %v1217_v37 = vpop.f32.mrb[39].mxu0  ;;  %2627 = vmatmul.mubr.bf16.vlgmr.msra.gmra.mrb[32].mxu1 %v1296_v46  ;;  %v1267_v51 = vmax.f32 %v3957_v40, 0.0 }
 0x591   :  { %v3963_v52 = vadd.f32 %v3927_v18, %v1217_v37  ;;  %2675 = vmatpush3.bf16.msra.mxu1 %v2775_v63  ;;  %v1265_v31 = vmax.f32 %v3954_v4, 0.0  ;;  %v2779_v63 = vld [vmem:[#allocation23 + $0x20] sm:$0xff]  }
 0x592   :  { %v1268_v59 = vmax.f32 %v3960_v54, 0.0  ;;  %2676 = vmatprep.subr.bf16.mxu1 %v2776_v30 }
 0x593   :  { %v1266_v45 = vmax.f32 %v3963_v52, 0.0 }
 0x594   :  { %v1298_v24 = vpack.c.bf16 %v1268_v59, %v1267_v51 }
 0x595   :  { %v1297_v9 = vpack.c.bf16 %v1266_v45, %v1265_v31  ;;  %v2604_v2 = vpop.f32.mrb[40].mxu0  ;;  %2677 = vmatpush3.bf16.msra.mxu1 %v2776_v30 }
 0x596   :  { %v1230_v20 = vpop.f32.mrb[41].mxu0  ;;  %2678 = vmatprep.subr.bf16.mxu1 %v2777_v7  ;;  %v3981_v12 = vadd.f32 %v2604_v2, %v3927_v18 }
 0x597   :  { %v3978_v10 = vadd.f32 %v3927_v18, %v1230_v20  ;;  %v2605_v23 = vpop.f32.mrb[42].mxu0  ;;  %2630 = vmatprep.mubr.bf16.mxu1 %v1297_v9  ;;  %v2781_v20 = vld [vmem:[#allocation23 + $0x30] sm:$0xff]  }
 0x598   :  { %v3984_v60 = vadd.f32 %v2605_v23, %v3927_v18  ;;  %v1233_v29 = vpop.f32.mrb[43].mxu0  ;;  %2631 = vmatmul.mubr.bf16.gmra.mrb[36].mxu1 %v1298_v24  ;;  %v1271_v38 = vmax.f32 %v3981_v12, 0.0 }
 0x599   :  { %v3987_v43 = vadd.f32 %v3927_v18, %v1233_v29  ;;  %2679 = vmatpush3.bf16.msra.mxu1 %v2777_v7  ;;  %v1269_v16 = vmax.f32 %v3978_v10, 0.0 }
 0x59a   :  { %v1272_v26 = vmax.f32 %v3984_v60, 0.0  ;;  %2680 = vmatprep.subr.bf16.mxu1 %v2778_v33 }
 0x59b   :  { %v1270_v17 = vmax.f32 %v3987_v43, 0.0 }
 0x59c   :  { %v1300_v49 = vpack.c.bf16 %v1272_v26, %v1271_v38 }
 0x59d   :  { %v1299_v32 = vpack.c.bf16 %v1270_v17, %v1269_v16  ;;  %v2608_v62 = vpop.f32.mrb[44].mxu0  ;;  %2681 = vmatpush3.bf16.msra.mxu1 %v2778_v33 }
 0x59e   :  { %v1246_v46 = vpop.f32.mrb[45].mxu0  ;;  %2682 = vmatprep.subr.bf16.mxu1 %v2779_v63  ;;  %v4005_v37 = vadd.f32 %v2608_v62, %v3927_v18 }
 0x59f   :  { %v4002_v30 = vadd.f32 %v3927_v18, %v1246_v46  ;;  %v2609_v35 = vpop.f32.mrb[46].mxu0  ;;  %2634 = vmatprep.mubr.bf16.mxu1 %v1299_v32 }
 0x5a0   :  { %v4008_v7 = vadd.f32 %v2609_v35, %v3927_v18  ;;  %v1249_v9 = vpop.f32.mrb[47].mxu0  ;;  %2635 = vmatmul.mubr.bf16.gmra.mrb[40].mxu1 %v1300_v49  ;;  %v1275_v29 = vmax.f32 %v4005_v37, 0.0 }
 0x5a1   :  { %v4011_v2 = vadd.f32 %v3927_v18, %v1249_v9  ;;  %2683 = vmatpush3.bf16.msra.mxu1 %v2779_v63  ;;  %v1273_v33 = vmax.f32 %v4002_v30, 0.0  ;;  %v2782_v63 = vld [vmem:[#allocation23 + $0x38] sm:$0xff]  }
 0x5a2   :  { %v1276_v24 = vmax.f32 %v4008_v7, 0.0  ;;  %2684 = vmatprep.subr.bf16.mxu1 %v2780_v28 }
 0x5a3   :  { %v1274_v23 = vmax.f32 %v4011_v2, 0.0 }
 0x5a4   :  { %v1302_v18 = vpack.c.bf16 %v1276_v24, %v1275_v29 }
 0x5a5   :  { %v1301_v32 = vpack.c.bf16 %v1274_v23, %v1273_v33  ;;  %2685 = vmatpush3.bf16.msra.mxu1 %v2780_v28 }
 0x5a6   :  { %2686 = vmatprep.subr.bf16.mxu1 %v2781_v20 }
 0x5a7   :  { %2638 = vmatprep.mubr.bf16.mxu1 %v1301_v32 }
 0x5a8   :  { %2639 = vmatmul.mubr.bf16.gmra.mrb[44].mxu1 %v1302_v18 }
 0x5a9   :  { %2687 = vmatpush3.bf16.msra.mxu1 %v2781_v20  ;;  %2690 = vmatprep.mubr.bf16.mxu1 %v3593_v44 }
 0x5aa   :  { %2688 = vmatprep.subr.bf16.mxu1 %v2782_v63 }
 0x5ad   :  { %2689 = vmatpush3.bf16.msra.mxu1 %v2782_v63 }
 0x5b0   :  { %2691 = vmatmul.mubr.bf16.vlgmr.msra.gmra.mrb[48].mxu1 %v3598_v47 }
 0x5b1   :  { %2694 = vmatprep.mubr.bf16.mxu1 %v3619_v58 }
 0x5b8   :  { %2695 = vmatmul.mubr.bf16.gmra.mrb[52].mxu1 %v3624_v61 }
 0x5b9   :  { %2698 = vmatprep.mubr.bf16.mxu1 %v3648_v8 }
 0x5c0   :  { %2699 = vmatmul.mubr.bf16.gmra.mrb[56].mxu1 %v3654_v11 }
 0x5c1   :  { %2702 = vmatprep.mubr.bf16.mxu1 %v3678_v21 }
 0x5c8   :  { %2703 = vmatmul.mubr.bf16.gmra.mrb[60].mxu1 %v3683_v22 }
 0x663   :  { %v2628_v62 = vpop.f32.mrb[32].mxu1 }
 0x664   :  { %v1385_v49 = vpop.f32.mrb[33].mxu1  ;;  %v4039_v47 = vsub.f32 %v1263_v1, %v2628_v62 }
 0x665   :  { %v4035_v44 = vsub.f32 %v1261_v25, %v1385_v49  ;;  %v2629_v46 = vpop.f32.mrb[34].mxu1 }
 0x666   :  { %v4043_v58 = vsub.f32 %v1264_v48, %v2629_v46  ;;  %v1388_v61 = vpop.f32.mrb[35].mxu1  ;;  %v1466_v13 = vmul.f32 %v4039_v47, %v4039_v47 }
 0x667   :  { %v4047_v8 = vsub.f32 %v1262_v27, %v1388_v61  ;;  %v1464_v21 = vmul.f32 %v4035_v44, %v4035_v44 }
 0x668   :  { %v1467_v11 = vmul.f32 %v4043_v58, %v4043_v58 }
 0x669   :  { %v1465_v22 = vmul.f32 %v4047_v8, %v4047_v8 }
 0x66a   :  { %v1481_v48 = vpack.c.bf16 %v1467_v11, %v1466_v13 }
 0x66b   :  { %v2632_v57 = vpop.f32.mrb[36].mxu1  ;;  %v1480_v34 = vpack.c.bf16 %v1465_v22, %v1464_v21 }
 0x66c   :  { %v1401_v25 = vpop.f32.mrb[37].mxu1  ;;  %v4063_v1 = vsub.f32 %v1267_v51, %v2632_v57 }
 0x66d   :  { %v4059_v15 = vsub.f32 %v1265_v31, %v1401_v25  ;;  %v2633_v27 = vpop.f32.mrb[38].mxu1  ;;  %2658 = vmatprep.mubr.bf16.mxu0 %v1480_v34 }
 0x66e   :  { %v4067_v28 = vsub.f32 %v1268_v59, %v2633_v27  ;;  %v1404_v35 = vpop.f32.mrb[39].mxu1  ;;  %2659 = vmatmul.mubr.bf16.vlgmr.msra.gmra.mrb[48].mxu0 %v1481_v48  ;;  %v1470_v54 = vmul.f32 %v4063_v1, %v4063_v1 }
 0x66f   :  { %v4071_v9 = vsub.f32 %v1266_v45, %v1404_v35  ;;  %v1468_v31 = vmul.f32 %v4059_v15, %v4059_v15 }
 0x670   :  { %v1471_v4 = vmul.f32 %v4067_v28, %v4067_v28 }
 0x671   :  { %v1469_v40 = vmul.f32 %v4071_v9, %v4071_v9 }
 0x672   :  { %v1483_v32 = vpack.c.bf16 %v1471_v4, %v1470_v54 }
 0x673   :  { %v2636_v59 = vpop.f32.mrb[40].mxu1  ;;  %v1482_v51 = vpack.c.bf16 %v1469_v40, %v1468_v31 }
 0x674   :  { %v1417_v20 = vpop.f32.mrb[41].mxu1  ;;  %v4087_v18 = vsub.f32 %v1271_v38, %v2636_v59 }
 0x675   :  { %v4083_v52 = vsub.f32 %v1269_v16, %v1417_v20  ;;  %v2637_v45 = vpop.f32.mrb[42].mxu1  ;;  %2662 = vmatprep.mubr.bf16.mxu0 %v1482_v51 }
 0x676   :  { %v4091_v63 = vsub.f32 %v1272_v26, %v2637_v45  ;;  %v1420_v62 = vpop.f32.mrb[43].mxu1  ;;  %2663 = vmatmul.mubr.bf16.gmra.mrb[52].mxu0 %v1483_v32  ;;  %v1474_v60 = vmul.f32 %v4087_v18, %v4087_v18 }
 0x677   :  { %v4095_v49 = vsub.f32 %v1270_v17, %v1420_v62  ;;  %v1472_v16 = vmul.f32 %v4083_v52, %v4083_v52 }
 0x678   :  { %v1475_v10 = vmul.f32 %v4091_v63, %v4091_v63 }
 0x679   :  { %v1473_v12 = vmul.f32 %v4095_v49, %v4095_v49 }
 0x67a   :  { %v1485_v61 = vpack.c.bf16 %v1475_v10, %v1474_v60 }
 0x67b   :  { %v2640_v26 = vpop.f32.mrb[44].mxu1  ;;  %v1484_v38 = vpack.c.bf16 %v1473_v12, %v1472_v16 }
 0x67c   :  { %v1433_v46 = vpop.f32.mrb[45].mxu1  ;;  %v4111_v11 = vsub.f32 %v1275_v29, %v2640_v26 }
 0x67d   :  { %v4107_v43 = vsub.f32 %v1273_v33, %v1433_v46  ;;  %v2641_v17 = vpop.f32.mrb[46].mxu1  ;;  %2666 = vmatprep.mubr.bf16.mxu0 %v1484_v38 }
 0x67e   :  { %v4115_v21 = vsub.f32 %v1276_v24, %v2641_v17  ;;  %v1436_v22 = vpop.f32.mrb[47].mxu1  ;;  %2667 = vmatmul.mubr.bf16.gmra.mrb[56].mxu0 %v1485_v61  ;;  %v1478_v7 = vmul.f32 %v4111_v11, %v4111_v11 }
 0x67f   :  { %v4119_v13 = vsub.f32 %v1274_v23, %v1436_v22  ;;  %v1476_v33 = vmul.f32 %v4107_v43, %v4107_v43 }
 0x680   :  { %v1479_v30 = vmul.f32 %v4115_v21, %v4115_v21 }
 0x681   :  { %v1477_v37 = vmul.f32 %v4119_v13, %v4119_v13 }
 0x682   :  { %v1487_v34 = vpack.c.bf16 %v1479_v30, %v1478_v7 }
 0x683   :  { %v2692_v24 = vpop.f32.mrb[48].mxu1  ;;  %v1486_v29 = vpack.c.bf16 %v1477_v37, %v1476_v33 }
 0x684   :  { %v1903_v57 = vpop.f32.mrb[49].mxu1 }
 0x685   :  { %2670 = vmatprep.mubr.bf16.mxu0 %v1486_v29  ;;  %v2693_v2 = vpop.f32.mrb[50].mxu1 }
 0x686   :  { %v2276_v23 = vpack.c.bf16 %v2693_v2, %v2692_v24  ;;  %2671 = vmatmul.mubr.bf16.gmra.mrb[60].mxu0 %v1487_v34  ;;  %v1906_v48 = vpop.f32.mrb[51].mxu1 }
 0x687   :  { %v2271_v25 = vpack.c.bf16 %v1906_v48, %v1903_v57 }
 0x688   :  { %2315 = vst [vmem:[#allocation28 + $0x8] sm:$0xff] %v2276_v23  }
 0x689   :  { %2272 = vst [vmem:[#allocation28] sm:$0xff] %v2271_v25  }
 0x68b   :  { %v2696_v27 = vpop.f32.mrb[52].mxu1 }
 0x68c   :  { %v1919_v35 = vpop.f32.mrb[53].mxu1 }
 0x68d   :  { %v2697_v4 = vpop.f32.mrb[54].mxu1 }
 0x68e   :  { %v2286_v31 = vpack.c.bf16 %v2697_v4, %v2696_v27  ;;  %v1922_v40 = vpop.f32.mrb[55].mxu1 }
 0x68f   :  { %v2281_v54 = vpack.c.bf16 %v1922_v40, %v1919_v35 }
 0x690   :  { %2317 = vst [vmem:[#allocation28 + $0x18] sm:$0xff] %v2286_v31  }
 0x691   :  { %2316 = vst [vmem:[#allocation28 + $0x10] sm:$0xff] %v2281_v54  }
 0x693   :  { %v2700_v59 = vpop.f32.mrb[56].mxu1 }
 0x694   :  { %v1935_v51 = vpop.f32.mrb[57].mxu1 }
 0x695   :  { %v2701_v20 = vpop.f32.mrb[58].mxu1 }
 0x696   :  { %v2296_v32 = vpack.c.bf16 %v2701_v20, %v2700_v59  ;;  %v1938_v45 = vpop.f32.mrb[59].mxu1 }
 0x697   :  { %v2291_v62 = vpack.c.bf16 %v1938_v45, %v1935_v51 }
 0x698   :  { %2319 = vst [vmem:[#allocation28 + $0x28] sm:$0xff] %v2296_v32  }
 0x699   :  { %2318 = vst [vmem:[#allocation28 + $0x20] sm:$0xff] %v2291_v62  }
 0x69b   :  { %v2704_v10 = vpop.f32.mrb[60].mxu1 }
 0x69c   :  { %v1951_v16 = vpop.f32.mrb[61].mxu1 }
 0x69d   :  { %v2705_v12 = vpop.f32.mrb[62].mxu1 }
 0x69e   :  { %v2306_v60 = vpack.c.bf16 %v2705_v12, %v2704_v10  ;;  %v1954_v26 = vpop.f32.mrb[63].mxu1 }
 0x69f   :  { %v2301_v38 = vpack.c.bf16 %v1954_v26, %v1951_v16 }
 0x6a0   :  { %2321 = vst [vmem:[#allocation28 + $0x38] sm:$0xff] %v2306_v60  }
 0x6a1   :  { %2320 = vst [vmem:[#allocation28 + $0x30] sm:$0xff] %v2301_v38  }
 0x6a2   :  { %3166 = shalt.err (!%p3163_p4)
}
 0x6a3   :  { %s3167_s23 = scalar_lea.hbm %s4254_s15, 2048 }
 0x6a4   :  { %p3168_p5 = scmp.ne.s32.totalorder %s4254_s15, %s3167_s23  ;;  %p3171_p6 = scmp.lt.u32.totalorder %s3167_s23, %s4254_s15 }
 0x6a6   :  { %p3173_p7 = pnand %p3171_p6, %p3168_p5 }
 0x6a8   :  { %3176 = shalt.err (!%p3173_p7)
}
 0x6a9   :  { %s3258_s6 = smov 128   ;;  %s3259_s17 = smov 8  }
 0x6aa   :  { %2069 = dma.vmem_to_hbm [thread:$0]  %s2064_s25, 2048, %s4254_s15, [#allocation27], %s3258_s6, %s3258_s6, %s3259_s17  }
 0x6ab   :  { %s3260_s9 = smov [#allocation28]  }
 0x6ac   :  { %s2075_s28 = sshll.u32 %s3260_s9, 4  ;;  %s2076_s28 = int_to_ptr.vmem [resolvable:$true] %s2075_s28 }
 0x6ad   :  { %s3177_s5 = scalar_lea.vmem %s2076_s28, 1024  ;;  %p3182_p9 = scmp.lt.s32.totalorder %s2076_s28, %s2076_s28 }
 0x6ae   :  { %p3178_p8 = scmp.ne.s32.totalorder %s2076_s28, %s3177_s5  ;;  %p3183_p10 = scmp.lt.s32.totalorder %s3177_s5, %s3177_s5 }
 0x6b0   :  { %p3184_p11 = por %p3183_p10, %p3182_p9 }
 0x6b2   :  { %p3185_p12 = pnand %p3184_p11, %p3178_p8 }
 0x6b4   :  { %3188 = shalt.err (!%p3185_p12)
}
 0x6b5   :  { %s3189_s11 = scalar_lea.hbm %s4255_s16, 1024 }
 0x6b6   :  { %p3190_p13 = scmp.ne.s32.totalorder %s4255_s16, %s3189_s11  ;;  %p3193_p0 = scmp.lt.u32.totalorder %s3189_s11, %s4255_s16 }
 0x6b8   :  { %p3195_p1 = pnand %p3193_p0, %p3190_p13 }
 0x6ba   :  { %3198 = shalt.err (!%p3195_p1)
}
 0x6bb   :  { %2081 = dma.vmem_to_hbm [thread:$0]  %s2076_s28, 1024, %s4255_s16, [#allocation27], %s3243_s18, %s3243_s18, %s3244_s19   ;;  %v4156_v32 = vld [vmem:[#allocation19] ss:$0 sm:$0xff]  ;;  %v4159_v12 = vld [vmem:[#allocation20] ss:$0 sm:$0xff] }
 0x6bc   :  { %s3261_s16 = smov [#allocation25]  }
 0x6bd   :  { %s2051_s8 = sshll.u32 %s3261_s16, 4  ;;  %s2052_s8 = int_to_ptr.vmem [resolvable:$true] %s2051_s8 }
 0x6be   :  { %s3199_s13 = scalar_lea.vmem %s2052_s8, 1024  ;;  %p3204_p3 = scmp.lt.s32.totalorder %s2052_s8, %s2052_s8 }
 0x6bf   :  { %p3200_p2 = scmp.ne.s32.totalorder %s2052_s8, %s3199_s13  ;;  %p3205_p4 = scmp.lt.s32.totalorder %s3199_s13, %s3199_s13 }
 0x6c1   :  { %p3206_p5 = por %p3205_p4, %p3204_p3 }
 0x6c3   :  { %p3207_p6 = pnand %p3206_p5, %p3200_p2 }
 0x741   :  { %v2660_v46 = vpop.f32.mrb[48].mxu0 }
 0x742   :  { %v1587_v61 = vmax.f32 %v2660_v46, 0.0  ;;  %v1522_v17 = vpop.f32.mrb[49].mxu0 }
 0x743   :  { %v1585_v22 = vmax.f32 %v1522_v17, 0.0  ;;  %v2661_v30 = vpop.f32.mrb[50].mxu0 }
 0x744   :  { %v1603_v33 = vadd.f32 1e-05, %v1587_v61  ;;  %v1588_v37 = vmax.f32 %v2661_v30, 0.0  ;;  %v1525_v7 = vpop.f32.mrb[51].mxu0 }
 0x745   :  { %v1601_v24 = vadd.f32 1e-05, %v1585_v22  ;;  %v1586_v29 = vmax.f32 %v1525_v7, 0.0 }
 0x746   :  { %2815 = vrsqrt.f32 %v1603_v33  ;;  %v1604_v57 = vadd.f32 1e-05, %v1588_v37 }
 0x747   :  { %2817 = vrsqrt.f32 %v1601_v24  ;;  %v1602_v34 = vadd.f32 1e-05, %v1586_v29 }
 0x748   :  { %2819 = vrsqrt.f32 %v1604_v57 }
 0x749   :  { %2821 = vrsqrt.f32 %v1602_v34  ;;  %v2664_v2 = vpop.f32.mrb[52].mxu0 }
 0x74a   :  { %v1591_v23 = vmax.f32 %v2664_v2, 0.0  ;;  %v1538_v48 = vpop.f32.mrb[53].mxu0 }
 0x74b   :  { %v1589_v25 = vmax.f32 %v1538_v48, 0.0  ;;  %v2665_v27 = vpop.f32.mrb[54].mxu0 }
 0x74c   :  { %v1607_v35 = vadd.f32 1e-05, %v1591_v23  ;;  %v1592_v4 = vmax.f32 %v2665_v27, 0.0  ;;  %v1541_v31 = vpop.f32.mrb[55].mxu0 }
 0x74d   :  { %v1605_v40 = vadd.f32 1e-05, %v1589_v25  ;;  %v1590_v54 = vmax.f32 %v1541_v31, 0.0 }
 0x74e   :  { %2823 = vrsqrt.f32 %v1607_v35  ;;  %v1608_v59 = vadd.f32 1e-05, %v1592_v4 }
 0x74f   :  { %2825 = vrsqrt.f32 %v1605_v40  ;;  %v1606_v51 = vadd.f32 1e-05, %v1590_v54 }
 0x750   :  { %v2816_v20 = vpop.eup %2815  ;;  %2827 = vrsqrt.f32 %v1608_v59 }
 0x751   :  { %v2818_v45 = vpop.eup %2817  ;;  %v1635_v62 = vmul.f32 %v2816_v20, %v4039_v47  ;;  %2829 = vrsqrt.f32 %v1606_v51  ;;  %v2668_v10 = vpop.f32.mrb[56].mxu0 }
 0x752   :  { %v2820_v16 = vpop.eup %2819  ;;  %v1633_v60 = vmul.f32 %v2818_v45, %v4035_v44  ;;  %v1595_v26 = vmax.f32 %v2668_v10, 0.0  ;;  %v1554_v38 = vpop.f32.mrb[57].mxu0 }
 0x753   :  { %v2822_v46 = vpop.eup %2821  ;;  %v1657_v61 = vmul.f32 %v4156_v32, %v1635_v62  ;;  %v1636_v17 = vmul.f32 %v2820_v16, %v4043_v58  ;;  %v1593_v22 = vmax.f32 %v1554_v38, 0.0  ;;  %v2669_v30 = vpop.f32.mrb[58].mxu0 }
 0x754   :  { %v1655_v33 = vmul.f32 %v4156_v32, %v1633_v60  ;;  %v1634_v47 = vmul.f32 %v2822_v46, %v4047_v8  ;;  %v1611_v37 = vadd.f32 1e-05, %v1595_v26  ;;  %v1596_v7 = vmax.f32 %v2669_v30, 0.0  ;;  %v1557_v24 = vpop.f32.mrb[59].mxu0 }
 0x755   :  { %v1679_v29 = vadd.f32 %v4159_v12, %v1657_v61  ;;  %v1658_v44 = vmul.f32 %v4156_v32, %v1636_v17  ;;  %v1609_v57 = vadd.f32 1e-05, %v1593_v22  ;;  %v1594_v34 = vmax.f32 %v1557_v24, 0.0 }
 0x756   :  { %v1677_v2 = vadd.f32 %v4159_v12, %v1655_v33  ;;  %v1656_v23 = vmul.f32 %v4156_v32, %v1634_v47  ;;  %2831 = vrsqrt.f32 %v1611_v37  ;;  %v1612_v58 = vadd.f32 1e-05, %v1596_v7 }
 0x757   :  { %v1680_v48 = vadd.f32 %v4159_v12, %v1658_v44  ;;  %2833 = vrsqrt.f32 %v1609_v57  ;;  %v1610_v25 = vadd.f32 1e-05, %v1594_v34  ;;  %v1695_v4 = vadd.f32 %v1679_v29, %v3577_v36 }
 0x758   :  { %v2824_v8 = vpop.eup %2823  ;;  %v1678_v27 = vadd.f32 %v4159_v12, %v1656_v23  ;;  %2835 = vrsqrt.f32 %v1612_v58  ;;  %v1693_v51 = vadd.f32 %v1677_v2, %v3580_v39 }
 0x759   :  { %v2826_v35 = vpop.eup %2825  ;;  %v1696_v31 = vadd.f32 %v1680_v48, %v3584_v41  ;;  %v1639_v40 = vmul.f32 %v2824_v8, %v4063_v1  ;;  %2837 = vrsqrt.f32 %v1610_v25  ;;  %v2672_v54 = vpop.f32.mrb[60].mxu0 }
 0x75a   :  { %v2828_v59 = vpop.eup %2827  ;;  %v1694_v20 = vadd.f32 %v1678_v27, %v3587_v42  ;;  %v1637_v45 = vmul.f32 %v2826_v35, %v4059_v15  ;;  %v1599_v62 = vmax.f32 %v2672_v54, 0.0  ;;  %v1570_v10 = vpop.f32.mrb[61].mxu0 }
 0x75b   :  { %v2830_v16 = vpop.eup %2829  ;;  %v2236_v60 = vpack.c.bf16 %v1696_v31, %v1695_v4  ;;  %v1661_v26 = vmul.f32 %v4156_v32, %v1639_v40  ;;  %v1640_v36 = vmul.f32 %v2828_v59, %v4067_v28  ;;  %v1597_v41 = vmax.f32 %v1570_v10, 0.0  ;;  %v2673_v38 = vpop.f32.mrb[62].mxu0 }
 0x75c   :  { %v2231_v1 = vpack.c.bf16 %v1694_v20, %v1693_v51  ;;  %v1659_v46 = vmul.f32 %v4156_v32, %v1637_v45  ;;  %v1638_v61 = vmul.f32 %v2830_v16, %v4071_v9  ;;  %v1615_v39 = vadd.f32 1e-05, %v1599_v62  ;;  %v1573_v17 = vpop.f32.mrb[63].mxu0 }
 0x75d   :  { %2308 = vst [vmem:[#allocation25 + $0x8] sm:$0xff] %v2236_v60   ;;  %v1683_v42 = vadd.f32 %v4159_v12, %v1661_v26  ;;  %v1662_v15 = vmul.f32 %v4156_v32, %v1640_v36  ;;  %v1613_v22 = vadd.f32 1e-05, %v1597_v41  ;;  %v1600_v30 = vmax.f32 %v2673_v38, 0.0 }
 0x75e   :  { %2232 = vst [vmem:[#allocation25] sm:$0xff] %v2231_v1   ;;  %v1681_v33 = vadd.f32 %v4159_v12, %v1659_v46  ;;  %v1660_v28 = vmul.f32 %v4156_v32, %v1638_v61  ;;  %2839 = vrsqrt.f32 %v1615_v39  ;;  %v1598_v47 = vmax.f32 %v1573_v17, 0.0  ;;  %v4264_v17 = vld [vmem:[#allocation40_spill] sm:$0xff] }
 0x75f   :  { %v1684_v37 = vadd.f32 %v4159_v12, %v1662_v15  ;;  %2841 = vrsqrt.f32 %v1613_v22  ;;  %v1616_v9 = vadd.f32 1e-05, %v1600_v30  ;;  %v1699_v57 = vadd.f32 %v1683_v42, %v3602_v50 }
 0x760   :  { %v2832_v7 = vpop.eup %2831  ;;  %v1682_v24 = vadd.f32 %v4159_v12, %v1660_v28  ;;  %v1614_v29 = vadd.f32 1e-05, %v1598_v47  ;;  %v1697_v58 = vadd.f32 %v1681_v33, %v3606_v53 }
 0x761   :  { %v2834_v44 = vpop.eup %2833  ;;  %v1700_v34 = vadd.f32 %v1684_v37, %v3610_v55  ;;  %v1643_v2 = vmul.f32 %v2832_v7, %v4087_v18  ;;  %2843 = vrsqrt.f32 %v1616_v9 }
 0x762   :  { %v2836_v23 = vpop.eup %2835  ;;  %v1698_v48 = vadd.f32 %v1682_v24, %v3613_v56  ;;  %v1641_v25 = vmul.f32 %v2834_v44, %v4083_v52  ;;  %2845 = vrsqrt.f32 %v1614_v29 }
 0x763   :  { %v2838_v8 = vpop.eup %2837  ;;  %v2246_v27 = vpack.c.bf16 %v1700_v34, %v1699_v57  ;;  %v1665_v35 = vmul.f32 %v4156_v32, %v1643_v2  ;;  %v1644_v4 = vmul.f32 %v2836_v23, %v4091_v63 }
 0x764   :  { %v2241_v50 = vpack.c.bf16 %v1698_v48, %v1697_v58  ;;  %v1663_v55 = vmul.f32 %v4156_v32, %v1641_v25  ;;  %v1642_v18 = vmul.f32 %v2838_v8, %v4095_v49 }
 0x765   :  { %2310 = vst [vmem:[#allocation25 + $0x18] sm:$0xff] %v2246_v27   ;;  %v1687_v31 = vadd.f32 %v4159_v12, %v1665_v35  ;;  %v1666_v53 = vmul.f32 %v4156_v32, %v1644_v4 }
 0x766   :  { %2309 = vst [vmem:[#allocation25 + $0x10] sm:$0xff] %v2241_v50   ;;  %v1685_v56 = vadd.f32 %v4159_v12, %v1663_v55  ;;  %v1664_v52 = vmul.f32 %v4156_v32, %v1642_v18 }
 0x767   :  { %v1688_v40 = vadd.f32 %v4159_v12, %v1666_v53  ;;  %v1703_v51 = vadd.f32 %v1687_v31, %v3629_v0 }
 0x768   :  { %v2840_v54 = vpop.eup %2839  ;;  %v1686_v63 = vadd.f32 %v4159_v12, %v1664_v52  ;;  %v1701_v45 = vadd.f32 %v1685_v56, %v3633_v3 }
 0x769   :  { %v2842_v59 = vpop.eup %2841  ;;  %v1704_v49 = vadd.f32 %v1688_v40, %v3638_v5  ;;  %v1647_v20 = vmul.f32 %v2840_v54, %v4111_v11 }
 0x76a   :  { %v1702_v62 = vadd.f32 %v1686_v63, %v3642_v6  ;;  %v1645_v10 = vmul.f32 %v2842_v59, %v4107_v43 }
 0x76b   :  { %v2844_v16 = vpop.eup %2843  ;;  %v2256_v60 = vpack.c.bf16 %v1704_v49, %v1703_v51  ;;  %v1669_v26 = vmul.f32 %v4156_v32, %v1647_v20 }
 0x76c   :  { %v2846_v36 = vpop.eup %2845  ;;  %v2251_v41 = vpack.c.bf16 %v1702_v62, %v1701_v45  ;;  %v1667_v38 = vmul.f32 %v4156_v32, %v1645_v10  ;;  %v1648_v0 = vmul.f32 %v2844_v16, %v4115_v21 }
 0x76d   :  { %2312 = vst [vmem:[#allocation25 + $0x28] sm:$0xff] %v2256_v60   ;;  %v1646_v5 = vmul.f32 %v2846_v36, %v4119_v13  ;;  %v1691_v3 = vadd.f32 %v4159_v12, %v1669_v26  ;;  %v4263_v13 = vld [vmem:[#allocation39_spill] sm:$0xff] }
 0x76e   :  { %2311 = vst [vmem:[#allocation25 + $0x20] sm:$0xff] %v2251_v41   ;;  %v1670_v6 = vmul.f32 %v4156_v32, %v1648_v0  ;;  %v1689_v43 = vadd.f32 %v4159_v12, %v1667_v38 }
 0x76f   :  { %v1668_v11 = vmul.f32 %v4156_v32, %v1646_v5  ;;  %v1707_v61 = vadd.f32 %v1691_v3, %v3659_v14 }
 0x770   :  { %v1692_v1 = vadd.f32 %v4159_v12, %v1670_v6  ;;  %v1705_v39 = vadd.f32 %v1689_v43, %v4263_v13 }
 0x771   :  { %v1690_v46 = vadd.f32 %v4159_v12, %v1668_v11 }
 0x772   :  { %v1708_v21 = vadd.f32 %v1692_v1, %v3668_v19 }
 0x773   :  { %v1706_v42 = vadd.f32 %v1690_v46, %v4264_v17 }
 0x774   :  { %v2266_v15 = vpack.c.bf16 %v1708_v21, %v1707_v61 }
 0x775   :  { %v2261_v22 = vpack.c.bf16 %v1706_v42, %v1705_v39 }
 0x776   :  { %2314 = vst [vmem:[#allocation25 + $0x38] sm:$0xff] %v2266_v15  }
 0x777   :  { %2313 = vst [vmem:[#allocation25 + $0x30] sm:$0xff] %v2261_v22  }
 0x778   :  { %3210 = shalt.err (!%p3207_p6)
}
 0x779   :  { %s3211_s3 = scalar_lea.hbm %s4253_s14, 1024 }
 0x77a   :  { %p3212_p7 = scmp.ne.s32.totalorder %s4253_s14, %s3211_s3  ;;  %p3215_p8 = scmp.lt.u32.totalorder %s3211_s3, %s4253_s14 }
 0x77c   :  { %p3217_p9 = pnand %p3215_p8, %p3212_p7 }
 0x77e   :  { %3220 = shalt.err (!%p3217_p9)
}
 0x77f   :  { %2057 = dma.vmem_to_hbm [thread:$0]  %s2052_s8, 1024, %s4253_s14, [#allocation4], %s3243_s18, %s3243_s18, %s3244_s19  }
 0x780   :  { %3237 = dma.done.wait [#allocation4], 1024  }
 0x781   :  { %3238 = vsyncadd [#allocation4], 4294966272 }
 0x782   :  { %3239 = dma.done.wait [#allocation27], 3072  }
 0x783   :  { %3240 = vsyncadd [#allocation27], 4294964224 }
 0x784   :  { %2091 = vsyncpa [#allocation3], 1 }
 0x785   :  { %2092 = vsyncpa [#allocation6], 1 }
 0x786   :  { %2093 = vsyncpa [#allocation9], 1 }
 0x787   :  { %2094 = vsyncpa [#allocation12], 1 }
 0x788   :  { %2095 = vsyncpa [#allocation15], 1 }
 0x789   :  { %2096 = vsyncpa [#allocation18], 1 }
 0x78a   :  { %2097 = vsyncpa [#allocation21], 1 }
 0x78b   :  { %2098 = vsyncpa [#allocation24], 1 }
 0x78c   :  { %2099 = vsyncpa [#allocation4], 1 }
 0x78d   :  { %2100 = vsyncpa [#allocation27], 1 }

</bundles_post_ra>
